<compile_context>
chip_gen: v7x
topology: tpu7x:2x2x1
jax: 0.10.0
libtpu: 0.0.40
codegen_flags: <defaults>
</compile_context>

<pallas_src>
import functools

import jax
import jax.numpy as jnp
from jax.experimental import pallas as pl
from jax.experimental.pallas import tpu as pltpu


def _round_up(x, m):
    return ((x + m - 1) // m) * m


def _make_vq_kernel(inner_axis):
    """Builds the tile kernel. `inner_axis` = grid axis iterating tiles per core."""

    def kernel(z_ref, e_ref, e2_ref, q_ref, idx_ref, n_ref, dw_ref, sse_ref):
        # z_ref:  (TN, D)   f32  rows of z for this tile (zero-padded past N)
        # e_ref:  (KP, D)   f32  codebook, K zero-padded to a multiple of 128
        # e2_ref: (1, KP)   f32  ||e||^2 (padded rows = +BIG so they never win)
        # q_ref:  (TN, D)   f32  quantized rows
        # idx_ref:(1,1,TN)  i32  closest codebook index per row (lane-dense)
        # n_ref:  (1,1,KP)  f32  per-core accumulated one-hot counts
        # dw_ref: (1,KP,D)  f32  per-core accumulated onehot^T @ z
        # sse_ref:(1,1,D)   f32  per-core per-lane SSE partials
        i = pl.program_id(inner_axis)

        z = z_ref[...]                 # (TN, D)
        e = e_ref[...]                 # (KP, D)
        tn, d = z.shape
        kp = e.shape[0]

        # argmin_k ||z - e_k||^2 is invariant to the per-row ||z||^2 constant,
        # so score = ||e||^2 - 2 z.e^T.  dot_general with contracting dims
        # ((1,),(1,)) avoids materializing e.T.
        cross = jax.lax.dot_general(
            z, e, (((1,), (1,)), ((), ())),
            preferred_element_type=jnp.float32)                     # (TN, KP)
        score = e2_ref[...] - 2.0 * cross                           # (TN, KP)

        # argmin along K with first-occurrence tie-break (matches torch.argmin).
        # TODO(synk): a NaN row would select the sentinel kp (all-zero one-hot);
        # torch.argmin would return 0 instead — matching that needs a NaN pre-pass.
        min_s = jnp.min(score, axis=-1, keepdims=True)              # (TN, 1)
        col = jax.lax.broadcasted_iota(jnp.int32, (tn, kp), 1)      # (TN, KP)
        closest = jnp.min(jnp.where(score == min_s, col, kp), axis=-1)   # (TN,)
        onehot = (col == closest[:, None]).astype(jnp.float32)      # (TN, KP)

        q = jnp.dot(onehot, e, preferred_element_type=jnp.float32)  # (TN, D)
        q_ref[...] = q
        # Lane-dense index store: long axis (TN) last.
        idx_ref[...] = closest.astype(jnp.int32)[None, None, :]

        # Per-core accumulators (output blocks are grid-resident across i).
        @pl.when(i == 0)
        def _():
            n_ref[...] = jnp.zeros_like(n_ref)
            dw_ref[...] = jnp.zeros_like(dw_ref)
            sse_ref[...] = jnp.zeros_like(sse_ref)

        # Axis-0 reductions routed through the (otherwise idle) MXU instead of
        # sublane reduces on the VPU/XLU.
        ones_row = jnp.ones((1, tn), jnp.float32)
        n_ref[...] += jax.lax.dot_general(
            ones_row, onehot, (((1,), (0,)), ((), ())),
            preferred_element_type=jnp.float32)[None]               # (1,1,KP)
        dw_ref[...] += jax.lax.dot_general(
            onehot, z, (((0,), (0,)), ((), ())),
            preferred_element_type=jnp.float32)[None]               # (1,KP,D)
        diff = q - z                   # padded rows: q = e[argmin e2], z = 0
        sse_ref[...] += jax.lax.dot_general(
            ones_row, diff * diff, (((1,), (0,)), ((), ())),
            preferred_element_type=jnp.float32)[None]               # (1,1,D)

    return kernel


def _vmem_limit_bytes(tn, d, kp):
    # Double-buffered block I/O + in-kernel (TN,KP)/(TN,D) temporaries, with
    # 1.5x headroom; clamped to [32 MiB, 64 MiB] so it is safe on v7x (64 MiB
    # physical VMEM) as well as v5e/v6e (128 MiB).
    io = 2 * 4 * (2 * tn * d + tn + 2 * kp * d + 2 * kp + d)
    tmp = 4 * (5 * tn * kp + 4 * tn * d)
    est = int(1.5 * (io + tmp))
    return int(max(32 << 20, min(64 << 20, est)))


def _vq_pallas(z_flat, embeddings, *, tile_n, num_cores):
    n, d = z_flat.shape
    k = embeddings.shape[0]
    kp = max(128, _round_up(k, 128))          # full-lane vregs for score/onehot/n_i

    # Effective tile: multiple of 8, no larger than needed per core.
    tn = max(8, min(_round_up(tile_n, 8), _round_up(pl.cdiv(n, num_cores), 8)))
    tpc = pl.cdiv(n, num_cores * tn)          # tiles per core
    n_pad = num_cores * tpc * tn
    total_tiles = num_cores * tpc

    z_flat = z_flat.astype(jnp.float32)
    if n_pad != n:
        # Padded rows are plain zeros; their exactly-known contribution to
        # n_i / sse is subtracted back out below (dw is unaffected since z=0).
        z_flat = jnp.pad(z_flat, ((0, n_pad - n), (0, 0)))

    embeddings = embeddings.astype(jnp.float32)
    e2 = jnp.sum(embeddings * embeddings, axis=-1)                 # (K,)  hoisted
    e_pad, e2_pad = embeddings, e2
    if kp != k:
        e_pad = jnp.pad(embeddings, ((0, kp - k), (0, 0)))
        e2_pad = jnp.concatenate([e2, jnp.full((kp - k,), 1e30, jnp.float32)])
    e2_pad = e2_pad[None, :]                                       # (1, KP)

    out_shapes = (
        jax.ShapeDtypeStruct((n_pad, d), jnp.float32),             # quantized rows
        jax.ShapeDtypeStruct((total_tiles, 1, tn), jnp.int32),     # indices
        jax.ShapeDtypeStruct((num_cores, 1, kp), jnp.float32),     # n_i partials
        jax.ShapeDtypeStruct((num_cores, kp, d), jnp.float32),     # dw partials
        jax.ShapeDtypeStruct((num_cores, 1, d), jnp.float32),      # sse partials
    )

    if num_cores > 1:
        # v7x: outer axis sharded across the two TensorCores.
        grid = (num_cores, tpc)
        dims = (pltpu.CORE_PARALLEL, pltpu.ARBITRARY)
        in_specs = [
            pl.BlockSpec((tn, d), lambda c, i, _t=tpc: (c * _t + i, 0)),
            pl.BlockSpec((kp, d), lambda c, i: (0, 0)),
            pl.BlockSpec((1, kp), lambda c, i: (0, 0)),
        ]
        out_specs = [
            pl.BlockSpec((tn, d), lambda c, i, _t=tpc: (c * _t + i, 0)),
            pl.BlockSpec((1, 1, tn), lambda c, i, _t=tpc: (c * _t + i, 0, 0)),
            pl.BlockSpec((1, 1, kp), lambda c, i: (c, 0, 0)),      # per-core acc
            pl.BlockSpec((1, kp, d), lambda c, i: (c, 0, 0)),      # per-core acc
            pl.BlockSpec((1, 1, d), lambda c, i: (c, 0, 0)),       # per-core acc
        ]
        inner_axis = 1
    else:
        # v5e/v6e: single TensorCore, plain 1-D grid over tiles.
        grid = (tpc,)
        dims = (pltpu.ARBITRARY,)
        in_specs = [
            pl.BlockSpec((tn, d), lambda i: (i, 0)),
            pl.BlockSpec((kp, d), lambda i: (0, 0)),
            pl.BlockSpec((1, kp), lambda i: (0, 0)),
        ]
        out_specs = [
            pl.BlockSpec((tn, d), lambda i: (i, 0)),
            pl.BlockSpec((1, 1, tn), lambda i: (i, 0, 0)),
            pl.BlockSpec((1, 1, kp), lambda i: (0, 0, 0)),
            pl.BlockSpec((1, kp, d), lambda i: (0, 0, 0)),
            pl.BlockSpec((1, 1, d), lambda i: (0, 0, 0)),
        ]
        inner_axis = 0

    grid_spec = pltpu.PrefetchScalarGridSpec(
        num_scalar_prefetch=0, grid=grid,
        in_specs=in_specs, out_specs=out_specs)

    q_pad, idx_tiles, n_parts, dw_parts, sse_parts = pl.pallas_call(
        _make_vq_kernel(inner_axis),
        out_shape=out_shapes,
        grid_spec=grid_spec,
        compiler_params=pltpu.CompilerParams(
            dimension_semantics=dims,
            vmem_limit_bytes=_vmem_limit_bytes(tn, d, kp)),
    )(z_flat, e_pad, e2_pad)

    q_flat = q_pad[:n] if n_pad != n else q_pad
    idx_flat = idx_tiles.reshape(n_pad)
    if n_pad != n:
        idx_flat = idx_flat[:n]

    n_i = jnp.sum(n_parts, axis=0)[0, :k]          # (K,)
    dw = jnp.sum(dw_parts, axis=0)[:k]             # (K, D)
    sse = jnp.sum(sse_parts)                       # scalar

    if n_pad != n:
        # Each padded (all-zero) row selects jmin = argmin(||e||^2); remove its
        # exact contribution from n_i and sse (dw got exactly 0 from z=0 rows).
        extra = jnp.float32(n_pad - n)
        jmin = jnp.argmin(e2)
        n_i = n_i.at[jmin].add(-extra)
        sse = sse - extra * e2[jmin]

    return q_flat, idx_flat, n_i, dw, sse


@functools.partial(jax.jit, static_argnames=("decay", "commitment_loss_factor",
                                              "training", "tile_n", "num_cores"))
def quantizer_ema_forward(z, embeddings, cluster_size, ema_embed, *,
                          decay=0.99, commitment_loss_factor=0.25,
                          training=False, tile_n=8192, num_cores=1):
    """Forward pass of QuantizerEMA.

    z: (B, H, W, D) float32 (channel-last, as the PyTorch module expects).
    num_cores: set to 2 on v7x (2 TensorCores per chip), 1 on v5e/v6e.
    Returns a dict with:
      quantized_vector : (B, D, H, W)   (NCHW)
      quantized_indices: (B, 1, H, W)   int32
      loss             : ()             commitment loss * factor
    plus (when training=True) updated buffers: embeddings, cluster_size, ema_embed.
    """
    b, h, w, d = z.shape
    k = embeddings.shape[0]
    n = b * h * w
    z_flat = z.reshape(n, d)

    q_flat, idx_flat, n_i, dw, sse = _vq_pallas(
        z_flat, embeddings, tile_n=tile_n, num_cores=num_cores)

    quantized = q_flat.reshape(b, h, w, d)
    quantized_indices = idx_flat.reshape(b, h, w)[:, None, :, :]      # (B,1,H,W)

    commitment_loss = sse / jnp.float32(n * d)                        # mse mean
    loss = commitment_loss * jnp.float32(commitment_loss_factor)

    if training:
        # Straight-through estimator (forward value == quantized).
        # TODO(synk): pallas_call has no VJP here; a custom_vjp would be needed
        # for gradients to actually flow through z in a training loop.
        quantized_st = z + jax.lax.stop_gradient(quantized - z)
    else:
        # Inference: the STE add/sub is an identity — skip the extra passes.
        quantized_st = quantized

    quantized_out = jnp.transpose(quantized_st, (0, 3, 1, 2))         # NCHW

    out = {
        "quantized_vector": quantized_out,
        "quantized_indices": quantized_indices,
        "loss": loss,
    }

    if training:
        # EMA buffer updates (plain-JAX glue, O(K*D)).
        # TODO(synk): dist.all_reduce for DDP has no single-device Pallas equivalent.
        new_cluster_size = cluster_size * decay + n_i * (1.0 - decay)
        new_ema_embed = ema_embed * decay + dw * (1.0 - decay)
        n_tot = jnp.sum(new_cluster_size)
        new_cluster_size = ((new_cluster_size + 1e-5)
                            / (n_tot + k * 1e-5) * n_tot)
        new_embeddings = new_ema_embed / new_cluster_size[:, None]
        out["embeddings"] = new_embeddings
        out["cluster_size"] = new_cluster_size
        out["ema_embed"] = new_ema_embed

    return out


if __name__ == "__main__":
    # Config (mirrors VQVAEConfig fields used by the module).
    num_embeddings = 64
    embedding_dim = 32
    decay = 0.99
    clf = 0.25

    key = jax.random.PRNGKey(0)
    k_emb, k_ema, k_z, k_z2 = jax.random.split(key, 4)
    bound = 1.0 / num_embeddings
    embeddings = jax.random.uniform(
        k_emb, (num_embeddings, embedding_dim), jnp.float32, -bound, bound)
    ema_embed = jax.random.uniform(
        k_ema, (num_embeddings, embedding_dim), jnp.float32, -bound, bound)
    cluster_size = jnp.zeros((num_embeddings,), jnp.float32)

    def ref_stats(z, idx, emb, csize, ema):
        """Reference commitment-loss / EMA math computed from kernel indices."""
        b, h, w, d = z.shape
        k = emb.shape[0]
        zf = z.reshape(-1, d)
        closest = idx.reshape(-1)
        onehot = jax.nn.one_hot(closest, k, dtype=jnp.float32)
        q = emb[closest]
        loss = jnp.mean((q - zf) ** 2) * clf
        n_i = jnp.sum(onehot, axis=0)
        dw = jnp.dot(onehot.T, zf, precision=jax.lax.Precision.HIGHEST)
        new_cs = csize * decay + n_i * (1.0 - decay)
        new_ema = ema * decay + dw * (1.0 - decay)
        ntot = jnp.sum(new_cs)
        new_cs = (new_cs + 1e-5) / (ntot + k * 1e-5) * ntot
        new_emb = new_ema / new_cs[:, None]
        return q, loss, new_cs, new_ema, new_emb

    def check_argmin(z, idx, emb, tol=1e-4):
        """The kernel's chosen index attains the per-row minimum distance."""
        zf = z.reshape(-1, emb.shape[1])
        dist = (jnp.sum(zf * zf, -1, keepdims=True)
                + jnp.sum(emb * emb, -1)[None, :]
                - 2.0 * jnp.dot(zf, emb.T, precision=jax.lax.Precision.HIGHEST))
        chosen = jnp.take_along_axis(dist, idx.reshape(-1, 1), axis=1)[:, 0]
        return bool(jnp.all(chosen <= jnp.min(dist, axis=-1) + tol))

    # --- eval-mode forward, z NHWC (2, 8, 8, 32) -------------------------------
    z = jax.random.normal(k_z, (2, 8, 8, embedding_dim), jnp.float32)
    out_eval = quantizer_ema_forward(
        z, embeddings, cluster_size, ema_embed,
        decay=decay, commitment_loss_factor=clf, training=False)
    jax.block_until_ready(out_eval)

    assert out_eval["quantized_vector"].shape == (2, embedding_dim, 8, 8)
    assert out_eval["quantized_indices"].shape == (2, 1, 8, 8)
    assert out_eval["loss"].shape == ()
    idx = out_eval["quantized_indices"].reshape(-1)
    assert bool(jnp.all((idx >= 0) & (idx < num_embeddings)))
    assert check_argmin(z, idx, embeddings)
    q_ref, loss_ref, _, _, _ = ref_stats(z, idx, embeddings, cluster_size, ema_embed)
    qv = jnp.transpose(out_eval["quantized_vector"],
                       (0, 2, 3, 1)).reshape(-1, embedding_dim)
    assert bool(jnp.allclose(qv, q_ref, atol=1e-5))
    assert bool(jnp.allclose(out_eval["loss"], loss_ref, rtol=1e-4, atol=1e-6))
    assert bool(jnp.isfinite(out_eval["loss"]))

    # --- training-mode forward on a ragged N (126) with a small tile (64) ------
    # exercises the zero-padded rows + wrapper n_i/sse correction path.
    z_r = jax.random.normal(k_z2, (2, 7, 9, embedding_dim), jnp.float32)
    out_train = quantizer_ema_forward(
        z_r, embeddings, cluster_size, ema_embed,
        decay=decay, commitment_loss_factor=clf, training=True, tile_n=64)
    jax.block_until_ready(out_train)

    assert out_train["embeddings"].shape == (num_embeddings, embedding_dim)
    assert out_train["cluster_size"].shape == (num_embeddings,)
    idx_r = out_train["quantized_indices"].reshape(-1)
    assert bool(jnp.all((idx_r >= 0) & (idx_r < num_embeddings)))
    assert check_argmin(z_r, idx_r, embeddings)
    _, loss_r, cs_r, ema_r, emb_r = ref_stats(
        z_r, idx_r, embeddings, cluster_size, ema_embed)
    assert bool(jnp.allclose(out_train["loss"], loss_r, rtol=1e-4, atol=1e-6))
    assert bool(jnp.allclose(out_train["cluster_size"], cs_r, rtol=1e-5, atol=1e-5))
    assert bool(jnp.allclose(out_train["ema_embed"], ema_r, rtol=1e-5, atol=1e-6))
    assert bool(jnp.allclose(out_train["embeddings"], emb_r, rtol=1e-4, atol=1e-4))

    print("KERNEL_OK")
</pallas_src>

<mosaic_0001>
module attributes {stable_mosaic.version = 11 : i64} {
  func.func @kernel(%arg0: i32, %arg1: memref<128x32xf32, #tpu.memory_space<vmem>>, %arg2: memref<128x32xf32, #tpu.memory_space<vmem>>, %arg3: memref<1x128xf32, #tpu.memory_space<vmem>>, %arg4: memref<128x32xf32, #tpu.memory_space<vmem>>, %arg5: memref<1x1x128xi32, #tpu.memory_space<vmem>>, %arg6: memref<1x1x128xf32, #tpu.memory_space<vmem>>, %arg7: memref<1x128x32xf32, #tpu.memory_space<vmem>>, %arg8: memref<1x1x32xf32, #tpu.memory_space<vmem>>) attributes {dimension_semantics = [#tpu.dimension_semantics<arbitrary>], iteration_bounds = array<i64: 1>, scalar_prefetch = 0 : i64, scratch_operands = 0 : i64, tpu.core_type = #tpu.core_type<tc>, window_params = [{transform_indices = @transform_0, window_bounds = array<i64: 128, 32>}, {pipeline_mode = #tpu.pipeline_mode<synchronous>, transform_indices = @transform_1, window_bounds = array<i64: 128, 32>}, {pipeline_mode = #tpu.pipeline_mode<synchronous>, transform_indices = @transform_2, window_bounds = array<i64: 1, 128>}, {transform_indices = @transform_3, window_bounds = array<i64: 128, 32>}, {transform_indices = @transform_4, window_bounds = array<i64: 1, 1, 128>}, {pipeline_mode = #tpu.pipeline_mode<synchronous>, transform_indices = @transform_5, window_bounds = array<i64: 1, 1, 128>}, {pipeline_mode = #tpu.pipeline_mode<synchronous>, transform_indices = @transform_6, window_bounds = array<i64: 1, 128, 32>}, {pipeline_mode = #tpu.pipeline_mode<synchronous>, transform_indices = @transform_7, window_bounds = array<i64: 1, 1, 32>}]} {
    %c0 = arith.constant 0 : index
    %c0_0 = arith.constant 0 : index
    %0 = vector.load %arg1[%c0, %c0_0] : memref<128x32xf32, #tpu.memory_space<vmem>>, vector<128x32xf32>
    %c0_1 = arith.constant 0 : index
    %c0_2 = arith.constant 0 : index
    %1 = vector.load %arg2[%c0_1, %c0_2] : memref<128x32xf32, #tpu.memory_space<vmem>>, vector<128x32xf32>
    %cst = arith.constant dense<0.000000e+00> : vector<128x128xf32>
    %2 = tpu.matmul %0, %1, %cst {dimension_numbers = #tpu.dot_dimension_numbers<[1], [1], [0], [0], [0, 0, 1, 0], [], []>} : vector<128x32xf32>, vector<128x32xf32>, vector<128x128xf32> -> vector<128x128xf32>
    %c0_3 = arith.constant 0 : index
    %c0_4 = arith.constant 0 : index
    %3 = vector.load %arg3[%c0_3, %c0_4] : memref<1x128xf32, #tpu.memory_space<vmem>>, vector<1x128xf32>
    %cst_5 = arith.constant 2.000000e+00 : f32
    %4 = vector.broadcast %cst_5 : f32 to vector<128x128xf32>
    %5 = arith.mulf %4, %2 : vector<128x128xf32>
    %6 = vector.broadcast %3 : vector<1x128xf32> to vector<128x128xf32>
    %7 = arith.subf %6, %5 : vector<128x128xf32>
    %cst_6 = arith.constant dense<0x7F800000> : vector<128xf32>
    %8 = vector.multi_reduction <minimumf>, %7, %cst_6 [1] : vector<128x128xf32> to vector<128xf32>
    %9 = vector.shape_cast %8 : vector<128xf32> to vector<128x1xf32>
    %10 = tpu.iota {dimensions = array<i32: 1>} : vector<128x128xi32>
    %11 = vector.broadcast %9 : vector<128x1xf32> to vector<128x128xf32>
    %12 = arith.cmpf oeq, %7, %11 : vector<128x128xf32>
    %c128_i32 = arith.constant 128 : i32
    %13 = vector.broadcast %c128_i32 : i32 to vector<128x128xi32>
    %14 = arith.select %12, %10, %13 : vector<128x128xi1>, vector<128x128xi32>
    %cst_7 = arith.constant dense<2147483647> : vector<128xi32>
    %15 = vector.multi_reduction <minsi>, %14, %cst_7 [1] : vector<128x128xi32> to vector<128xi32>
    %16 = vector.shape_cast %15 : vector<128xi32> to vector<128x1xi32>
    %17 = vector.broadcast %16 : vector<128x1xi32> to vector<128x128xi32>
    %18 = arith.cmpi eq, %10, %17 : vector<128x128xi32>
    %19 = arith.extui %18 : vector<128x128xi1> to vector<128x128xi32>
    %20 = arith.sitofp %19 : vector<128x128xi32> to vector<128x128xf32>
    %cst_8 = arith.constant dense<0.000000e+00> : vector<128x32xf32>
    %21 = tpu.matmul %20, %1, %cst_8 {dimension_numbers = #tpu.dot_dimension_numbers<[1], [0], [0], [1], [0, 0, 1, 1], [], []>} : vector<128x128xf32>, vector<128x32xf32>, vector<128x32xf32> -> vector<128x32xf32>
    %c0_9 = arith.constant 0 : index
    %c0_10 = arith.constant 0 : index
    %22 = vector.load %arg4[%c0_9, %c0_10] : memref<128x32xf32, #tpu.memory_space<vmem>>, vector<128x32xf32>
    tpu.vector_store %arg4[%c0_9, %c0_10], %21 {strides = array<i32>} : memref<128x32xf32, #tpu.memory_space<vmem>>, vector<128x32xf32>,
    %23 = vector.shape_cast %15 : vector<128xi32> to vector<1x1x128xi32>
    %c0_11 = arith.constant 0 : index
    %c0_12 = arith.constant 0 : index
    %c0_13 = arith.constant 0 : index
    %24 = vector.load %arg5[%c0_11, %c0_12, %c0_13] : memref<1x1x128xi32, #tpu.memory_space<vmem>>, vector<1x1x128xi32>
    tpu.vector_store %arg5[%c0_11, %c0_12, %c0_13], %23 {strides = array<i32>} : memref<1x1x128xi32, #tpu.memory_space<vmem>>, vector<1x1x128xi32>,
    %c0_i32 = arith.constant 0 : i32
    %25 = arith.cmpi eq, %arg0, %c0_i32 : i32
    %26 = arith.extui %25 : i1 to i32
    %c0_i32_14 = arith.constant 0 : i32
    %27 = arith.cmpi ne, %26, %c0_i32_14 : i32
    scf.if %27 {
      %cst_37 = arith.constant 0.000000e+00 : f32
      %46 = vector.broadcast %cst_37 : f32 to vector<1x1x128xf32>
      %c0_38 = arith.constant 0 : index
      %c0_39 = arith.constant 0 : index
      %c0_40 = arith.constant 0 : index
      %47 = vector.load %arg6[%c0_38, %c0_39, %c0_40] : memref<1x1x128xf32, #tpu.memory_space<vmem>>, vector<1x1x128xf32>
      tpu.vector_store %arg6[%c0_38, %c0_39, %c0_40], %46 {strides = array<i32>} : memref<1x1x128xf32, #tpu.memory_space<vmem>>, vector<1x1x128xf32>,
      %cst_41 = arith.constant 0.000000e+00 : f32
      %48 = vector.broadcast %cst_41 : f32 to vector<1x128x32xf32>
      %c0_42 = arith.constant 0 : index
      %c0_43 = arith.constant 0 : index
      %c0_44 = arith.constant 0 : index
      %49 = vector.load %arg7[%c0_42, %c0_43, %c0_44] : memref<1x128x32xf32, #tpu.memory_space<vmem>>, vector<1x128x32xf32>
      tpu.vector_store %arg7[%c0_42, %c0_43, %c0_44], %48 {strides = array<i32>} : memref<1x128x32xf32, #tpu.memory_space<vmem>>, vector<1x128x32xf32>,
      %cst_45 = arith.constant 0.000000e+00 : f32
      %50 = vector.broadcast %cst_45 : f32 to vector<1x1x32xf32>
      %c0_46 = arith.constant 0 : index
      %c0_47 = arith.constant 0 : index
      %c0_48 = arith.constant 0 : index
      %51 = vector.load %arg8[%c0_46, %c0_47, %c0_48] : memref<1x1x32xf32, #tpu.memory_space<vmem>>, vector<1x1x32xf32>
      tpu.vector_store %arg8[%c0_46, %c0_47, %c0_48], %50 {strides = array<i32>} : memref<1x1x32xf32, #tpu.memory_space<vmem>>, vector<1x1x32xf32>,
    } else {
    }
    %cst_15 = arith.constant 1.000000e+00 : f32
    %28 = vector.broadcast %cst_15 : f32 to vector<1x128xf32>
    %c0_16 = arith.constant 0 : index
    %c0_17 = arith.constant 0 : index
    %c0_18 = arith.constant 0 : index
    %29 = vector.load %arg6[%c0_16, %c0_17, %c0_18] : memref<1x1x128xf32, #tpu.memory_space<vmem>>, vector<1x1x128xf32>
    %cst_19 = arith.constant dense<0.000000e+00> : vector<1x128xf32>
    %30 = tpu.matmul %28, %20, %cst_19 {dimension_numbers = #tpu.dot_dimension_numbers<[1], [0], [0], [1], [0, 0, 1, 1], [], []>} : vector<1x128xf32>, vector<128x128xf32>, vector<1x128xf32> -> vector<1x128xf32>
    %31 = vector.shape_cast %30 : vector<1x128xf32> to vector<1x1x128xf32>
    %32 = arith.addf %29, %31 : vector<1x1x128xf32>
    %c0_20 = arith.constant 0 : index
    %c0_21 = arith.constant 0 : index
    %c0_22 = arith.constant 0 : index
    %33 = vector.load %arg6[%c0_20, %c0_21, %c0_22] : memref<1x1x128xf32, #tpu.memory_space<vmem>>, vector<1x1x128xf32>
    tpu.vector_store %arg6[%c0_20, %c0_21, %c0_22], %32 {strides = array<i32>} : memref<1x1x128xf32, #tpu.memory_space<vmem>>, vector<1x1x128xf32>,
    %c0_23 = arith.constant 0 : index
    %c0_24 = arith.constant 0 : index
    %c0_25 = arith.constant 0 : index
    %34 = vector.load %arg7[%c0_23, %c0_24, %c0_25] : memref<1x128x32xf32, #tpu.memory_space<vmem>>, vector<1x128x32xf32>
    %cst_26 = arith.constant dense<0.000000e+00> : vector<128x32xf32>
    %35 = tpu.matmul %20, %0, %cst_26 {dimension_numbers = #tpu.dot_dimension_numbers<[0], [0], [1], [1], [0, 1, 1, 1], [], []>} : vector<128x128xf32>, vector<128x32xf32>, vector<128x32xf32> -> vector<128x32xf32>
    %36 = vector.shape_cast %35 : vector<128x32xf32> to vector<1x128x32xf32>
    %37 = arith.addf %34, %36 : vector<1x128x32xf32>
    %c0_27 = arith.constant 0 : index
    %c0_28 = arith.constant 0 : index
    %c0_29 = arith.constant 0 : index
    %38 = vector.load %arg7[%c0_27, %c0_28, %c0_29] : memref<1x128x32xf32, #tpu.memory_space<vmem>>, vector<1x128x32xf32>
    tpu.vector_store %arg7[%c0_27, %c0_28, %c0_29], %37 {strides = array<i32>} : memref<1x128x32xf32, #tpu.memory_space<vmem>>, vector<1x128x32xf32>,
    %39 = arith.subf %21, %0 : vector<128x32xf32>
    %c0_30 = arith.constant 0 : index
    %c0_31 = arith.constant 0 : index
    %c0_32 = arith.constant 0 : index
    %40 = vector.load %arg8[%c0_30, %c0_31, %c0_32] : memref<1x1x32xf32, #tpu.memory_space<vmem>>, vector<1x1x32xf32>
    %41 = arith.mulf %39, %39 : vector<128x32xf32>
    %cst_33 = arith.constant dense<0.000000e+00> : vector<1x32xf32>
    %42 = tpu.matmul %28, %41, %cst_33 {dimension_numbers = #tpu.dot_dimension_numbers<[1], [0], [0], [1], [0, 0, 1, 1], [], []>} : vector<1x128xf32>, vector<128x32xf32>, vector<1x32xf32> -> vector<1x32xf32>
    %43 = vector.shape_cast %42 : vector<1x32xf32> to vector<1x1x32xf32>
    %44 = arith.addf %40, %43 : vector<1x1x32xf32>
    %c0_34 = arith.constant 0 : index
    %c0_35 = arith.constant 0 : index
    %c0_36 = arith.constant 0 : index
    %45 = vector.load %arg8[%c0_34, %c0_35, %c0_36] : memref<1x1x32xf32, #tpu.memory_space<vmem>>, vector<1x1x32xf32>
    tpu.vector_store %arg8[%c0_34, %c0_35, %c0_36], %44 {strides = array<i32>} : memref<1x1x32xf32, #tpu.memory_space<vmem>>, vector<1x1x32xf32>,
    return
  }
  func.func @transform_0(%arg0: i32) -> (i32, i32) {
    %c0_i32 = arith.constant 0 : i32
    %c0_i32_0 = arith.constant 0 : i32
    return %arg0, %c0_i32 : i32, i32
  }
  func.func @transform_1(%arg0: i32) -> (i32, i32) {
    %c0_i32 = arith.constant 0 : i32
    %c0_i32_0 = arith.constant 0 : i32
    %c0_i32_1 = arith.constant 0 : i32
    return %c0_i32, %c0_i32_0 : i32, i32
  }
  func.func @transform_2(%arg0: i32) -> (i32, i32) {
    %c0_i32 = arith.constant 0 : i32
    %c0_i32_0 = arith.constant 0 : i32
    %c0_i32_1 = arith.constant 0 : i32
    return %c0_i32, %c0_i32_0 : i32, i32
  }
  func.func @transform_3(%arg0: i32) -> (i32, i32) {
    %c0_i32 = arith.constant 0 : i32
    %c0_i32_0 = arith.constant 0 : i32
    return %arg0, %c0_i32 : i32, i32
  }
  func.func @transform_4(%arg0: i32) -> (i32, i32, i32) {
    %c0_i32 = arith.constant 0 : i32
    %c0_i32_0 = arith.constant 0 : i32
    %c0_i32_1 = arith.constant 0 : i32
    return %arg0, %c0_i32, %c0_i32_0 : i32, i32, i32
  }
  func.func @transform_5(%arg0: i32) -> (i32, i32, i32) {
    %c0_i32 = arith.constant 0 : i32
    %c0_i32_0 = arith.constant 0 : i32
    %c0_i32_1 = arith.constant 0 : i32
    %c0_i32_2 = arith.constant 0 : i32
    return %c0_i32, %c0_i32_0, %c0_i32_1 : i32, i32, i32
  }
  func.func @transform_6(%arg0: i32) -> (i32, i32, i32) {
    %c0_i32 = arith.constant 0 : i32
    %c0_i32_0 = arith.constant 0 : i32
    %c0_i32_1 = arith.constant 0 : i32
    %c0_i32_2 = arith.constant 0 : i32
    return %c0_i32, %c0_i32_0, %c0_i32_1 : i32, i32, i32
  }
  func.func @transform_7(%arg0: i32) -> (i32, i32, i32) {
    %c0_i32 = arith.constant 0 : i32
    %c0_i32_0 = arith.constant 0 : i32
    %c0_i32_1 = arith.constant 0 : i32
    %c0_i32_2 = arith.constant 0 : i32
    return %c0_i32, %c0_i32_0, %c0_i32_1 : i32, i32, i32
  }
}

</mosaic_0001>

<bundles_post_ra>
// kernel: quantizer_ema_forward.1
= control target key start
LH: loop header
LB: loop body
LE: loop exit
PB: predicated region body
PF: predicated region fallthrough
CT: control target
= control target key end

     0   :  { %13 = vsyncpa [#allocation3], 0  ;;  %vm53_vm0 = vcmask 261120   ;;  %s3166_s0 = inlined_call_operand.vmem [shape: f32[128,32], index: 0, kind: input, shape index: {}]   ;;  %s3167_s1 = inlined_call_operand.vmem [shape: f32[128,32], index: 1, kind: input, shape index: {}]   ;;  %s3168_s2 = inlined_call_operand.vmem [shape: f32[1,128], index: 2, kind: input, shape index: {}]   ;;  %s3169_s3 = inlined_call_operand.hbm [shape: f32[128,32], index: 3, kind: output, shape index: {0}]   ;;  %s3170_s4 = inlined_call_operand.vmem [shape: s32[1,1,128], index: 4, kind: output, shape index: {1}]   ;;  %s3171_s5 = inlined_call_operand.hbm [shape: f32[1,1,128], index: 5, kind: output, shape index: {2}]   ;;  %s3172_s6 = inlined_call_operand.hbm [shape: f32[1,128,32], index: 6, kind: output, shape index: {3}]   ;;  %s3173_s7 = inlined_call_operand.vmem [shape: f32[1,1,32], index: 7, kind: output, shape index: {4}]  }
   0x1   :  { %v37_v0 = vld [vmem:[%s3167_s1] sm:$0xff]  ;;  %v38_v1 = vld [vmem:[%s3167_s1 + $0x8] sm:$0xff]  ;;  %v39_v2 = vld [vmem:[%s3167_s1 + $0x10] sm:$0xff] }
   0x2   :  { %v1872_v3 = vpack.c.bf16 %v38_v1, %v37_v0  ;;  %vm2189_vm1 = vmpackc.low %vm53_vm0, %vm53_vm0  ;;  %v40_v5 = vld [vmem:[%s3167_s1 + $0x18] sm:$0xff]  ;;  %v41_v7 = vld [vmem:[%s3167_s1 + $0x20] sm:$0xff] }
   0x3   :  { %v1878_v6 = vpack.c.bf16 %v40_v5, %v39_v2  ;;  %v42_v8 = vld [vmem:[%s3167_s1 + $0x28] sm:$0xff]  ;;  %v2211_v9 = vld [vmem:[%s3166_s0] sm:$0xff]  ;;  %v43_v11 = vld [vmem:[%s3167_s1 + $0x30] sm:$0xff] }
   0x4   :  { %1874 = vmatprep.subr.msk.bf16.mxu0 %vm2189_vm1, %v1872_v3  ;;  %1921 = vmatprep.subr.bf16.mxu1 %v1872_v3  ;;  %v1884_v10 = vpack.c.bf16 %v42_v8, %v41_v7  ;;  %v44_v12 = vld [vmem:[%s3167_s1 + $0x38] sm:$0xff] }
   0x5   :  { %1877 = vmatpush3.bf16.xpose.msk.msra.mxu0 %vm2189_vm1, %v1872_v3  ;;  %1923 = vmatpush3.bf16.msra.mxu1 %v1872_v3  ;;  %v1890_v13 = vpack.c.bf16 %v44_v12, %v43_v11 }
   0x6   :  { %1880 = vmatprep.subr.msk.bf16.mxu0 %vm2189_vm1, %v1878_v6  ;;  %1925 = vmatprep.subr.bf16.mxu1 %v1878_v6 }
   0x7   :  { %1666 = vmatprep.mubr.msk.f32.mxu0 %vm53_vm0, %v2211_v9 }
   0x9   :  { %1927 = vmatpush3.bf16.msra.mxu1 %v1878_v6 }
   0xa   :  { %1929 = vmatprep.subr.bf16.mxu1 %v1884_v10 }
   0xb   :  { %14 = vsyncpa [#allocation5], 0  ;;  %v45_v14 = vld [vmem:[%s3167_s1 + $0x40] sm:$0xff]  ;;  %v46_v15 = vld [vmem:[%s3167_s1 + $0x48] sm:$0xff]  ;;  %s2134_s28 = smov [#allocation2]  }
   0xc   :  { %v1896_v16 = vpack.c.bf16 %v46_v15, %v45_v14  ;;  %v47_v17 = vld [vmem:[%s3167_s1 + $0x50] sm:$0xff]  ;;  %v48_v18 = vld [vmem:[%s3167_s1 + $0x58] sm:$0xff]  ;;  %v49_v20 = vld [vmem:[%s3167_s1 + $0x60] sm:$0xff]  ;;  %s1375_s29 = sshll.u32 %s2134_s28, 4  ;;  %s1376_s29 = int_to_ptr.vmem [resolvable:$true] %s1375_s29 }
   0xd   :  { %1883 = vmatpush3.bf16.xpose.msk.msra.mxu0 %vm2189_vm1, %v1878_v6  ;;  %1931 = vmatpush3.bf16.msra.mxu1 %v1884_v10  ;;  %v1902_v19 = vpack.c.bf16 %v48_v18, %v47_v17  ;;  %v50_v21 = vld [vmem:[%s3167_s1 + $0x68] sm:$0xff]  ;;  %v51_v23 = vld [vmem:[%s3167_s1 + $0x70] sm:$0xff]  ;;  %v52_v24 = vld [vmem:[%s3167_s1 + $0x78] sm:$0xff] }
   0xe   :  { %1886 = vmatprep.subr.msk.bf16.mxu0 %vm2189_vm1, %v1884_v10  ;;  %1933 = vmatprep.subr.bf16.mxu1 %v1890_v13  ;;  %v1908_v22 = vpack.c.bf16 %v50_v21, %v49_v20  ;;  %v1914_v25 = vpack.c.bf16 %v52_v24, %v51_v23  ;;  %v2274_v26 = vld [vmem:[%s3166_s0 + $0x8] sm:$0xff]  ;;  %v2279_v27 = vld [vmem:[%s3166_s0 + $0x10] sm:$0xff]  ;;  %v2288_v28 = vld [vmem:[%s3166_s0 + $0x18] sm:$0xff] }
   0xf   :  { %v2293_v29 = vld [vmem:[%s3166_s0 + $0x20] sm:$0xff]  ;;  %v2302_v30 = vld [vmem:[%s3166_s0 + $0x28] sm:$0xff]  ;;  %v2307_v31 = vld [vmem:[%s3166_s0 + $0x30] sm:$0xff] }
  0x10   :  { %v2316_v32 = vld [vmem:[%s3166_s0 + $0x38] sm:$0xff]  ;;  %v2321_v33 = vld [vmem:[%s3166_s0 + $0x40] sm:$0xff]  ;;  %v2330_v34 = vld [vmem:[%s3166_s0 + $0x48] sm:$0xff] }
  0x11   :  { %1935 = vmatpush3.bf16.msra.mxu1 %v1890_v13  ;;  %v2335_v35 = vld [vmem:[%s3166_s0 + $0x50] sm:$0xff]  ;;  %v2344_v36 = vld [vmem:[%s3166_s0 + $0x58] sm:$0xff]  ;;  %v2349_v37 = vld [vmem:[%s3166_s0 + $0x60] sm:$0xff] }
  0x12   :  { %1937 = vmatprep.subr.bf16.mxu1 %v1896_v16  ;;  %v2358_v38 = vld [vmem:[%s3166_s0 + $0x68] sm:$0xff]  ;;  %v2363_v39 = vld [vmem:[%s3166_s0 + $0x70] sm:$0xff]  ;;  %v2372_v40 = vld [vmem:[%s3166_s0 + $0x78] sm:$0xff] }
  0x13   :  { %v1455_v43 = vld [vmem:[%s3168_s2] ss:$0 sm:$0xff] }
  0x15   :  { %1889 = vmatpush3.bf16.xpose.msk.msra.mxu0 %vm2189_vm1, %v1884_v10  ;;  %1939 = vmatpush3.bf16.msra.mxu1 %v1896_v16 }
  0x16   :  { %1892 = vmatprep.subr.msk.bf16.mxu0 %vm2189_vm1, %v1890_v13  ;;  %1941 = vmatprep.subr.bf16.mxu1 %v1902_v19 }
  0x19   :  { %1943 = vmatpush3.bf16.msra.mxu1 %v1902_v19 }
  0x1a   :  { %1945 = vmatprep.subr.bf16.mxu1 %v1908_v22 }
  0x1d   :  { %1895 = vmatpush3.bf16.xpose.msk.msra.mxu0 %vm2189_vm1, %v1890_v13  ;;  %1947 = vmatpush3.bf16.msra.mxu1 %v1908_v22 }
  0x1e   :  { %1898 = vmatprep.subr.msk.bf16.mxu0 %vm2189_vm1, %v1896_v16  ;;  %1949 = vmatprep.subr.bf16.mxu1 %v1914_v25 }
  0x21   :  { %1951 = vmatpush3.bf16.msra.mxu1 %v1914_v25 }
  0x25   :  { %1901 = vmatpush3.bf16.xpose.msk.msra.mxu0 %vm2189_vm1, %v1896_v16 }
  0x26   :  { %1904 = vmatprep.subr.msk.bf16.mxu0 %vm2189_vm1, %v1902_v19 }
  0x2d   :  { %1907 = vmatpush3.bf16.xpose.msk.msra.mxu0 %vm2189_vm1, %v1902_v19 }
  0x2e   :  { %1910 = vmatprep.subr.msk.bf16.mxu0 %vm2189_vm1, %v1908_v22 }
  0x35   :  { %1913 = vmatpush3.bf16.xpose.msk.msra.mxu0 %vm2189_vm1, %v1908_v22 }
  0x36   :  { %1916 = vmatprep.subr.msk.bf16.mxu0 %vm2189_vm1, %v1914_v25 }
  0x3d   :  { %1919 = vmatpush3.bf16.xpose.msk.msra.mxu0 %vm2189_vm1, %v1914_v25 }
  0x44   :  { %1667 = vmatmul.mubr.msk.f32.vlgmr.msra.gmra.mrb[0].mxu0 %vm53_vm0, %v2274_v26 }
  0x45   :  { %1669 = vmatprep.mubr.msk.f32.mxu0 %vm53_vm0, %v2279_v27 }
  0x48   :  { %1670 = vmatmul.mubr.msk.f32.gmra.mrb[2].mxu0 %vm53_vm0, %v2288_v28 }
  0x49   :  { %1672 = vmatprep.mubr.msk.f32.mxu0 %vm53_vm0, %v2293_v29 }
  0x4c   :  { %1673 = vmatmul.mubr.msk.f32.gmra.mrb[4].mxu0 %vm53_vm0, %v2302_v30 }
  0x4d   :  { %1675 = vmatprep.mubr.msk.f32.mxu0 %vm53_vm0, %v2307_v31 }
  0x50   :  { %1676 = vmatmul.mubr.msk.f32.gmra.mrb[6].mxu0 %vm53_vm0, %v2316_v32 }
  0x51   :  { %1678 = vmatprep.mubr.msk.f32.mxu0 %vm53_vm0, %v2321_v33 }
  0x54   :  { %1679 = vmatmul.mubr.msk.f32.gmra.mrb[8].mxu0 %vm53_vm0, %v2330_v34 }
  0x55   :  { %1681 = vmatprep.mubr.msk.f32.mxu0 %vm53_vm0, %v2335_v35 }
  0x58   :  { %1682 = vmatmul.mubr.msk.f32.gmra.mrb[10].mxu0 %vm53_vm0, %v2344_v36 }
  0x59   :  { %1684 = vmatprep.mubr.msk.f32.mxu0 %vm53_vm0, %v2349_v37 }
  0x5c   :  { %1685 = vmatmul.mubr.msk.f32.gmra.mrb[12].mxu0 %vm53_vm0, %v2358_v38 }
  0x5d   :  { %1687 = vmatprep.mubr.msk.f32.mxu0 %vm53_vm0, %v2363_v39 }
  0x60   :  { %1688 = vmatmul.mubr.msk.f32.gmra.mrb[14].mxu0 %vm53_vm0, %v2372_v40 }
 0x117   :  { %v1668_v41 = vpop.f32.mrb[0].mxu0 }
 0x118   :  { %v216_v42 = vpop.f32.mrb[1].mxu0  ;;  %v297_v45 = vmul.f32 2.0, %v1668_v41 }
 0x119   :  { %v296_v44 = vmul.f32 2.0, %v216_v42  ;;  %v366_v42 = vlaneseq }
 0x11a   :  { %v2382_v52 = vsub.f32 %v1455_v43, %v297_v45 }
 0x11b   :  { %v1671_v46 = vpop.f32.mrb[2].mxu0  ;;  %v2379_v47 = vsub.f32 %v1455_v43, %v296_v44  ;;  %v2428_v44 = vand.u32 127, %v366_v42 }
 0x11c   :  { %v226_v48 = vpop.f32.mrb[3].mxu0  ;;  %v299_v50 = vmul.f32 2.0, %v1671_v46 }
 0x11d   :  { %v298_v49 = vmul.f32 2.0, %v226_v48  ;;  %334 = vmin.xlane.f32.xlu0 %v2379_v47 }
 0x11e   :  { %v2388_v58 = vsub.f32 %v1455_v43, %v299_v50 }
 0x11f   :  { %v1674_v51 = vpop.f32.mrb[4].mxu0  ;;  %v2384_v53 = vsub.f32 %v1455_v43, %v298_v49 }
 0x120   :  { %v236_v54 = vpop.f32.mrb[5].mxu0  ;;  %v301_v56 = vmul.f32 2.0, %v1674_v51 }
 0x121   :  { %v300_v55 = vmul.f32 2.0, %v236_v54  ;;  %336 = vmin.xlane.f32.xlu0 %v2382_v52  ;;  %338 = vmin.xlane.f32.xlu1 %v2384_v53 }
 0x122   :  { %v2394_v0 = vsub.f32 %v1455_v43, %v301_v56 }
 0x123   :  { %v1677_v57 = vpop.f32.mrb[6].mxu0  ;;  %v2390_v59 = vsub.f32 %v1455_v43, %v300_v55 }
 0x124   :  { %v246_v60 = vpop.f32.mrb[7].mxu0  ;;  %v303_v62 = vmul.f32 2.0, %v1677_v57 }
 0x125   :  { %v302_v61 = vmul.f32 2.0, %v246_v60  ;;  %340 = vmin.xlane.f32.xlu1 %v2388_v58  ;;  %342 = vmin.xlane.f32.xlu0 %v2390_v59 }
 0x126   :  { %v2400_v6 = vsub.f32 %v1455_v43, %v303_v62 }
 0x127   :  { %v1680_v63 = vpop.f32.mrb[8].mxu0  ;;  %v2396_v1 = vsub.f32 %v1455_v43, %v302_v61 }
 0x128   :  { %v256_v2 = vpop.f32.mrb[9].mxu0  ;;  %v305_v4 = vmul.f32 2.0, %v1680_v63 }
 0x129   :  { %v304_v3 = vmul.f32 2.0, %v256_v2  ;;  %344 = vmin.xlane.f32.xlu1 %v2394_v0  ;;  %346 = vmin.xlane.f32.xlu0 %v2396_v1 }
 0x12a   :  { %v2406_v13 = vsub.f32 %v1455_v43, %v305_v4 }
 0x12b   :  { %v1683_v5 = vpop.f32.mrb[10].mxu0  ;;  %v2402_v7 = vsub.f32 %v1455_v43, %v304_v3 }
 0x12c   :  { %v266_v8 = vpop.f32.mrb[11].mxu0  ;;  %v307_v11 = vmul.f32 2.0, %v1683_v5 }
 0x12d   :  { %v306_v10 = vmul.f32 2.0, %v266_v8  ;;  %348 = vmin.xlane.f32.xlu1 %v2400_v6  ;;  %350 = vmin.xlane.f32.xlu0 %v2402_v7 }
 0x12e   :  { %v2412_v19 = vsub.f32 %v1455_v43, %v307_v11 }
 0x12f   :  { %v1686_v12 = vpop.f32.mrb[12].mxu0  ;;  %v2408_v14 = vsub.f32 %v1455_v43, %v306_v10 }
 0x130   :  { %v276_v15 = vpop.f32.mrb[13].mxu0  ;;  %v309_v17 = vmul.f32 2.0, %v1686_v12 }
 0x131   :  { %v308_v16 = vmul.f32 2.0, %v276_v15  ;;  %352 = vmin.xlane.f32.xlu1 %v2406_v13  ;;  %354 = vmin.xlane.f32.xlu0 %v2408_v14 }
 0x132   :  { %v2418_v24 = vsub.f32 %v1455_v43, %v309_v17 }
 0x133   :  { %v1689_v18 = vpop.f32.mrb[14].mxu0  ;;  %v2414_v20 = vsub.f32 %v1455_v43, %v308_v16 }
 0x134   :  { %v286_v21 = vpop.f32.mrb[15].mxu0  ;;  %v311_v23 = vmul.f32 2.0, %v1689_v18 }
 0x135   :  { %v310_v22 = vmul.f32 2.0, %v286_v21  ;;  %356 = vmin.xlane.f32.xlu1 %v2412_v19  ;;  %358 = vmin.xlane.f32.xlu0 %v2414_v20 }
 0x136   :  { %v2424_v41 = vsub.f32 %v1455_v43, %v311_v23 }
 0x137   :  { %v2420_v25 = vsub.f32 %v1455_v43, %v310_v22 }
 0x139   :  { %360 = vmin.xlane.f32.xlu1 %v2418_v24  ;;  %362 = vmin.xlane.f32.xlu0 %v2420_v25 }
 0x13d   :  { %364 = vmin.xlane.f32.xlu1 %v2424_v41 }
 0x1aa   :  { %v335_v45 = vpop.xlane.xlu0 %334 }
 0x1ab   :  { %vm368_vm2 = vcmp.eq.f32.partialorder %v2379_v47, %v335_v45 }
 0x1ac   :  { %v2432_v46 = vsel %vm368_vm2, %v2428_v44, 128 }
 0x1ad   :  { %v401_v48 = vshra.s32 %v2432_v46, 16 }
 0x1ae   :  { %v337_v49 = vpop.xlane.xlu0 %336  ;;  %v339_v50 = vpop.xlane.xlu1 %338 }
 0x1af   :  { %vm369_vm3 = vcmp.eq.f32.partialorder %v2382_v52, %v337_v49  ;;  %vm370_vm4 = vcmp.eq.f32.partialorder %v2384_v53, %v339_v50  ;;  %v2437_v43 = vcvt.s32.f32 %v401_v48 }
 0x1b0   :  { %v2440_v51 = vsel %vm369_vm3, %v2428_v44, 128  ;;  %v2443_v54 = vsel %vm370_vm4, %v2428_v44, 128 }
 0x1b1   :  { %404 = vmin.xlane.f32.xlu0 %v2437_v43  ;;  %v415_v47 = vshra.s32 %v2440_v51, 16  ;;  %v429_v55 = vshra.s32 %v2443_v54, 16 }
 0x1b2   :  { %v341_v56 = vpop.xlane.xlu1 %340  ;;  %v343_v57 = vpop.xlane.xlu0 %342 }
 0x1b3   :  { %vm371_vm5 = vcmp.eq.f32.partialorder %v2388_v58, %v341_v56  ;;  %vm372_vm6 = vcmp.eq.f32.partialorder %v2390_v59, %v343_v57  ;;  %v2450_v52 = vcvt.s32.f32 %v415_v47  ;;  %v2452_v53 = vcvt.s32.f32 %v429_v55 }
 0x1b4   :  { %v2455_v60 = vsel %vm371_vm5, %v2428_v44, 128  ;;  %v2458_v61 = vsel %vm372_vm6, %v2428_v44, 128 }
 0x1b5   :  { %418 = vmin.xlane.f32.xlu1 %v2450_v52  ;;  %432 = vmin.xlane.f32.xlu0 %v2452_v53  ;;  %v443_v62 = vshra.s32 %v2455_v60, 16  ;;  %v457_v58 = vshra.s32 %v2458_v61, 16 }
 0x1b6   :  { %v345_v63 = vpop.xlane.xlu1 %344  ;;  %v347_v59 = vpop.xlane.xlu0 %346 }
 0x1b7   :  { %vm373_vm7 = vcmp.eq.f32.partialorder %v2394_v0, %v345_v63  ;;  %vm374_vm8 = vcmp.eq.f32.partialorder %v2396_v1, %v347_v59  ;;  %v2466_v2 = vcvt.s32.f32 %v443_v62  ;;  %v2468_v3 = vcvt.s32.f32 %v457_v58 }
 0x1b8   :  { %v2471_v4 = vsel %vm373_vm7, %v2428_v44, 128  ;;  %v2474_v5 = vsel %vm374_vm8, %v2428_v44, 128 }
 0x1b9   :  { %446 = vmin.xlane.f32.xlu1 %v2466_v2  ;;  %460 = vmin.xlane.f32.xlu0 %v2468_v3  ;;  %v471_v8 = vshra.s32 %v2471_v4, 16  ;;  %v485_v0 = vshra.s32 %v2474_v5, 16 }
 0x1ba   :  { %v349_v10 = vpop.xlane.xlu1 %348  ;;  %v351_v1 = vpop.xlane.xlu0 %350 }
 0x1bb   :  { %vm375_vm9 = vcmp.eq.f32.partialorder %v2400_v6, %v349_v10  ;;  %vm376_vm10 = vcmp.eq.f32.partialorder %v2402_v7, %v351_v1  ;;  %v2482_v11 = vcvt.s32.f32 %v471_v8  ;;  %v2484_v12 = vcvt.s32.f32 %v485_v0 }
 0x1bc   :  { %v2487_v15 = vsel %vm375_vm9, %v2428_v44, 128  ;;  %v2490_v16 = vsel %vm376_vm10, %v2428_v44, 128 }
 0x1bd   :  { %474 = vmin.xlane.f32.xlu1 %v2482_v11  ;;  %488 = vmin.xlane.f32.xlu0 %v2484_v12  ;;  %v499_v17 = vshra.s32 %v2487_v15, 16  ;;  %v513_v6 = vshra.s32 %v2490_v16, 16 }
 0x1be   :  { %v353_v18 = vpop.xlane.xlu1 %352  ;;  %v355_v7 = vpop.xlane.xlu0 %354 }
 0x1bf   :  { %vm377_vm11 = vcmp.eq.f32.partialorder %v2406_v13, %v353_v18  ;;  %vm378_vm12 = vcmp.eq.f32.partialorder %v2408_v14, %v355_v7  ;;  %v2498_v21 = vcvt.s32.f32 %v499_v17  ;;  %v2500_v22 = vcvt.s32.f32 %v513_v6 }
 0x1c0   :  { %v2503_v23 = vsel %vm377_vm11, %v2428_v44, 128  ;;  %v2506_v45 = vsel %vm378_vm12, %v2428_v44, 128  ;;  %v400_v7 = vand.u32 65535, %v2432_v46 }
 0x1c1   :  { %502 = vmin.xlane.f32.xlu1 %v2498_v21  ;;  %516 = vmin.xlane.f32.xlu0 %v2500_v22  ;;  %v527_v48 = vshra.s32 %v2503_v23, 16  ;;  %v541_v13 = vshra.s32 %v2506_v45, 16 }
 0x1c2   :  { %v357_v49 = vpop.xlane.xlu1 %356  ;;  %v359_v14 = vpop.xlane.xlu0 %358 }
 0x1c3   :  { %vm379_vm13 = vcmp.eq.f32.partialorder %v2412_v19, %v357_v49  ;;  %vm380_vm14 = vcmp.eq.f32.partialorder %v2414_v20, %v359_v14  ;;  %v2514_v50 = vcvt.s32.f32 %v527_v48  ;;  %v2516_v47 = vcvt.s32.f32 %v541_v13 }
 0x1c4   :  { %v2519_v55 = vsel %vm379_vm13, %v2428_v44, 128  ;;  %v2522_v56 = vsel %vm380_vm14, %v2428_v44, 128  ;;  %v428_v48 = vand.u32 65535, %v2443_v54  ;;  %v402_v49 = vcvt.s32.f32 %v400_v7 }
 0x1c5   :  { %530 = vmin.xlane.f32.xlu1 %v2514_v50  ;;  %544 = vmin.xlane.f32.xlu0 %v2516_v47  ;;  %v555_v57 = vshra.s32 %v2519_v55, 16  ;;  %v569_v19 = vshra.s32 %v2522_v56, 16 }
 0x1c6   :  { %v361_v62 = vpop.xlane.xlu1 %360  ;;  %v363_v20 = vpop.xlane.xlu0 %362 }
 0x1c7   :  { %vm381_vm15 = vcmp.eq.f32.partialorder %v2418_v24, %v361_v62  ;;  %vm382_vm1 = vcmp.eq.f32.partialorder %v2420_v25, %v363_v20  ;;  %v2530_v58 = vcvt.s32.f32 %v555_v57  ;;  %v2532_v63 = vcvt.s32.f32 %v569_v19 }
 0x1c8   :  { %v2535_v59 = vsel %vm381_vm15, %v2428_v44, 128  ;;  %v2538_v8 = vsel %vm382_vm1, %v2428_v44, 128  ;;  %v442_v57 = vand.u32 65535, %v2455_v60  ;;  %v456_v19 = vand.u32 65535, %v2458_v61 }
 0x1c9   :  { %558 = vmin.xlane.f32.xlu1 %v2530_v58  ;;  %572 = vmin.xlane.f32.xlu0 %v2532_v63  ;;  %v583_v0 = vshra.s32 %v2535_v59, 16  ;;  %v597_v24 = vshra.s32 %v2538_v8, 16  ;;  %v470_v60 = vand.u32 65535, %v2471_v4  ;;  %v484_v61 = vand.u32 65535, %v2474_v5 }
 0x1ca   :  { %v365_v10 = vpop.xlane.xlu1 %364  ;;  %v498_v4 = vand.u32 65535, %v2487_v15  ;;  %v512_v5 = vand.u32 65535, %v2490_v16  ;;  %v526_v15 = vand.u32 65535, %v2503_v23  ;;  %v540_v16 = vand.u32 65535, %v2506_v45 }
 0x1cb   :  { %vm383_vm2 = vcmp.eq.f32.partialorder %v2424_v41, %v365_v10  ;;  %v2545_v25 = vcvt.s32.f32 %v583_v0  ;;  %v2547_v1 = vcvt.s32.f32 %v597_v24  ;;  %v414_v41 = vand.u32 65535, %v2440_v51 }
 0x1cc   :  { %v2550_v17 = vsel %vm383_vm2, %v2428_v44, 128  ;;  %v430_v51 = vcvt.s32.f32 %v428_v48  ;;  %v444_v10 = vcvt.s32.f32 %v442_v57  ;;  %v472_v48 = vcvt.s32.f32 %v470_v60 }
 0x1cd   :  { %586 = vmin.xlane.f32.xlu1 %v2545_v25  ;;  %600 = vmin.xlane.f32.xlu0 %v2547_v1  ;;  %v611_v6 = vshra.s32 %v2550_v17, 16  ;;  %v416_v46 = vcvt.s32.f32 %v414_v41  ;;  %v568_v23 = vand.u32 65535, %v2522_v56  ;;  %v542_v60 = vcvt.s32.f32 %v540_v16 }
 0x1ce   :  { %v596_v56 = vand.u32 65535, %v2538_v8  ;;  %v610_v8 = vand.u32 65535, %v2550_v17  ;;  %v1988_v16 = vpack.c.bf16 %v2316_v32, %v2307_v31 }
 0x1cf   :  { %v2555_v18 = vcvt.s32.f32 %v611_v6  ;;  %v458_v6 = vcvt.s32.f32 %v456_v19  ;;  %v500_v19 = vcvt.s32.f32 %v498_v4 }
 0x1d1   :  { %614 = vmin.xlane.f32.xlu1 %v2555_v18 }
 0x23e   :  { %v2561_v13 = vpop.xlane.xlu0 %404 }
 0x23f   :  { %vm406_vm3 = vcmp.eq.f32.partialorder %v2437_v43, %v2561_v13 }
 0x240   :  { %v407_v14 = vsel %vm406_vm3, %v402_v49, inf  ;;  %v486_v49 = vcvt.s32.f32 %v484_v61  ;;  %v582_v61 = vand.u32 65535, %v2535_v59 }
 0x241   :  { %408 = vmin.xlane.f32.xlu0 %v407_v14 }
 0x242   :  { %v2567_v62 = vpop.xlane.xlu1 %418  ;;  %v2569_v20 = vpop.xlane.xlu0 %432 }
 0x243   :  { %vm420_vm4 = vcmp.eq.f32.partialorder %v2450_v52, %v2567_v62  ;;  %vm434_vm5 = vcmp.eq.f32.partialorder %v2452_v53, %v2569_v20 }
 0x244   :  { %v421_v54 = vsel %vm420_vm4, %v416_v46, inf  ;;  %v435_v43 = vsel %vm434_vm5, %v430_v51, inf  ;;  %v514_v46 = vcvt.s32.f32 %v512_v5  ;;  %v554_v51 = vand.u32 65535, %v2519_v55 }
 0x245   :  { %422 = vmin.xlane.f32.xlu1 %v421_v54  ;;  %436 = vmin.xlane.f32.xlu0 %v435_v43  ;;  %v528_v43 = vcvt.s32.f32 %v526_v15  ;;  %v584_v5 = vcvt.s32.f32 %v582_v61  ;;  %v1984_v15 = vpack.c.bf16 %v2302_v30, %v2293_v29  ;;  %v425_v29 = vcvt.f32.s32 %v2567_v62 }
 0x246   :  { %v2577_v0 = vpop.xlane.xlu1 %446  ;;  %v2579_v24 = vpop.xlane.xlu0 %460  ;;  %v556_v55 = vcvt.s32.f32 %v554_v51  ;;  %v439_v30 = vcvt.f32.s32 %v2569_v20  ;;  %vm842_vm4 = vcmask 130112   ;;  %vm849_vm5 = vcmask 195712  }
 0x247   :  { %vm448_vm6 = vcmp.eq.f32.partialorder %v2466_v2, %v2577_v0  ;;  %vm462_vm7 = vcmp.eq.f32.partialorder %v2468_v3, %v2579_v24  ;;  %v453_v31 = vcvt.f32.s32 %v2577_v0  ;;  %v467_v32 = vcvt.f32.s32 %v2579_v24 }
 0x248   :  { %v449_v52 = vsel %vm448_vm6, %v444_v10, inf  ;;  %v463_v53 = vsel %vm462_vm7, %v458_v6, inf  ;;  %vm856_vm6 = vcmask 261312  }
 0x249   :  { %450 = vmin.xlane.f32.xlu1 %v449_v52  ;;  %464 = vmin.xlane.f32.xlu0 %v463_v53  ;;  %v570_v52 = vcvt.s32.f32 %v568_v23  ;;  %v454_v0 = vshll.u32 %v453_v31, 16  ;;  %v468_v24 = vshll.u32 %v467_v32, 16  ;;  %v2721_v23 = vadd.s32 4294967272, %v2428_v44 }
 0x24a   :  { %v2587_v7 = vpop.xlane.xlu1 %474  ;;  %v2589_v41 = vpop.xlane.xlu0 %488 }
 0x24b   :  { %vm476_vm8 = vcmp.eq.f32.partialorder %v2482_v11, %v2587_v7  ;;  %vm490_vm9 = vcmp.eq.f32.partialorder %v2484_v12, %v2589_v41 }
 0x24c   :  { %v477_v2 = vsel %vm476_vm8, %v472_v48, inf  ;;  %v491_v3 = vsel %vm490_vm9, %v486_v49, inf  ;;  %v598_v48 = vcvt.s32.f32 %v596_v56  ;;  %vm863_vm8 = vcmask 326912  }
 0x24d   :  { %478 = vmin.xlane.f32.xlu1 %v477_v2  ;;  %492 = vmin.xlane.f32.xlu0 %v491_v3  ;;  %v612_v2 = vcvt.s32.f32 %v610_v8  ;;  %vm870_vm9 = vcmask 392512  }
 0x24e   :  { %v2597_v14 = vpop.xlane.xlu1 %502  ;;  %v2599_v57 = vpop.xlane.xlu0 %516 }
 0x24f   :  { %vm504_vm10 = vcmp.eq.f32.partialorder %v2498_v21, %v2597_v14  ;;  %vm518_vm11 = vcmp.eq.f32.partialorder %v2500_v22, %v2599_v57 }
 0x250   :  { %v505_v11 = vsel %vm504_vm10, %v500_v19, inf  ;;  %v519_v12 = vsel %vm518_vm11, %v514_v46, inf }
 0x251   :  { %506 = vmin.xlane.f32.xlu1 %v505_v11  ;;  %520 = vmin.xlane.f32.xlu0 %v519_v12 }
 0x252   :  { %v2607_v45 = vpop.xlane.xlu1 %530  ;;  %v2609_v54 = vpop.xlane.xlu0 %544 }
 0x253   :  { %vm532_vm12 = vcmp.eq.f32.partialorder %v2514_v50, %v2607_v45  ;;  %vm546_vm13 = vcmp.eq.f32.partialorder %v2516_v47, %v2609_v54  ;;  %v2128_v50 = vmov 0.0   ;;  %v537_v62 = vcvt.f32.s32 %v2607_v45 }
 0x254   :  { %v533_v21 = vsel %vm532_vm12, %v528_v43, inf  ;;  %v547_v22 = vsel %vm546_vm13, %v542_v60, inf  ;;  %947 = vst [vmem:[#allocation4] sm:$0x1] %v2128_v50  ;;  %948 = vst.msk [vmem:[#allocation6] sm:$0xff] %vm53_vm0, %v2128_v50  ;;  %v551_v20 = vcvt.f32.s32 %v2609_v54  ;;  %v858_v60 = vadd.s32 4294967264, %v2428_v44 }
 0x255   :  { %534 = vmin.xlane.f32.xlu1 %v533_v21  ;;  %548 = vmin.xlane.f32.xlu0 %v547_v22  ;;  %949 = vst.msk [vmem:[#allocation6 + $0x8] sm:$0xff] %vm53_vm0, %v2128_v50  ;;  %950 = vst.msk [vmem:[#allocation6 + $0x10] sm:$0xff] %vm53_vm0, %v2128_v50  ;;  %v2723_v45 = vshll.u32 %v537_v62, 16  ;;  %vm877_vm13 = vcmask 458112   ;;  %v886_v62 = vadd.s32 4294967232, %v2428_v44 }
 0x256   :  { %v2617_v10 = vpop.xlane.xlu1 %558  ;;  %v2619_v6 = vpop.xlane.xlu0 %572  ;;  %951 = vst.msk [vmem:[#allocation6 + $0x18] sm:$0xff] %vm53_vm0, %v2128_v50  ;;  %952 = vst.msk [vmem:[#allocation6 + $0x20] sm:$0xff] %vm53_vm0, %v2128_v50  ;;  %v2725_v54 = vshll.u32 %v551_v20, 16 }
 0x257   :  { %vm560_vm14 = vcmp.eq.f32.partialorder %v2530_v58, %v2617_v10  ;;  %vm574_vm15 = vcmp.eq.f32.partialorder %v2532_v63, %v2619_v6  ;;  %953 = vst.msk [vmem:[#allocation6 + $0x28] sm:$0xff] %vm53_vm0, %v2128_v50  ;;  %954 = vst.msk [vmem:[#allocation6 + $0x30] sm:$0xff] %vm53_vm0, %v2128_v50  ;;  %v2129_v58 = vmov 0.0|0.0   ;;  %v579_v46 = vcvt.f32.s32 %v2619_v6 }
 0x258   :  { %955 = vst.msk [vmem:[#allocation6 + $0x38] sm:$0xff] %vm53_vm0, %v2128_v50  ;;  %956 = vst.msk [vmem:[#allocation6 + $0x40] sm:$0xff] %vm53_vm0, %v2128_v50  ;;  %v561_v47 = vsel %vm560_vm14, %v556_v55, inf  ;;  %v575_v59 = vsel %vm574_vm15, %v570_v52, inf  ;;  %1952 = vmatprep.subr.bf16.mxu1 %v2129_v58 }
 0x259   :  { %957 = vst.msk [vmem:[#allocation6 + $0x48] sm:$0xff] %vm53_vm0, %v2128_v50  ;;  %958 = vst.msk [vmem:[#allocation6 + $0x50] sm:$0xff] %vm53_vm0, %v2128_v50  ;;  %562 = vmin.xlane.f32.xlu1 %v561_v47  ;;  %576 = vmin.xlane.f32.xlu0 %v575_v59  ;;  %v2733_v56 = vshll.u32 %v579_v46, 16 }
 0x25a   :  { %959 = vst.msk [vmem:[#allocation6 + $0x58] sm:$0xff] %vm53_vm0, %v2128_v50  ;;  %960 = vst.msk [vmem:[#allocation6 + $0x60] sm:$0xff] %vm53_vm0, %v2128_v50  ;;  %v2665_v53 = vpop.xlane.xlu1 %586  ;;  %v2667_v4 = vpop.xlane.xlu0 %600 }
 0x25b   :  { %961 = vst.msk [vmem:[#allocation6 + $0x68] sm:$0xff] %vm53_vm0, %v2128_v50  ;;  %962 = vst.msk [vmem:[#allocation6 + $0x70] sm:$0xff] %vm53_vm0, %v2128_v50  ;;  %vm588_vm1 = vcmp.eq.f32.partialorder %v2545_v25, %v2665_v53  ;;  %vm602_vm2 = vcmp.eq.f32.partialorder %v2547_v1, %v2667_v4  ;;  %v1976_v25 = vpack.c.bf16 %v2274_v26, %v2211_v9  ;;  %v593_v21 = vcvt.f32.s32 %v2665_v53 }
 0x25c   :  { %963 = vst.msk [vmem:[#allocation6 + $0x78] sm:$0xff] %vm53_vm0, %v2128_v50  ;;  %v589_v63 = vsel %vm588_vm1, %v584_v5, inf  ;;  %v603_v49 = vsel %vm602_vm2, %v598_v48, inf  ;;  %v1980_v1 = vpack.c.bf16 %v2288_v28, %v2279_v27  ;;  %v1996_v9 = vpack.c.bf16 %v2344_v36, %v2335_v35 }
 0x25d   :  { %590 = vmin.xlane.f32.xlu1 %v589_v63  ;;  %604 = vmin.xlane.f32.xlu0 %v603_v49  ;;  %v2000_v26 = vpack.c.bf16 %v2358_v38, %v2349_v37  ;;  %v411_v27 = vcvt.f32.s32 %v2561_v13  ;;  %v2694_v28 = vshrl.u32 %v366_v42, 7  ;;  %v509_v36 = vcvt.f32.s32 %v2597_v14 }
 0x25e   :  { %v2674_v17 = vpop.xlane.xlu1 %614  ;;  %1977 = vmatprep.subr.bf16.mxu0 %v1976_v25  ;;  %v523_v37 = vcvt.f32.s32 %v2599_v57  ;;  %v426_v42 = vshll.u32 %v425_v29, 16  ;;  %v440_v13 = vshll.u32 %v439_v30, 16  ;;  %v565_v57 = vcvt.f32.s32 %v2617_v10 }
 0x25f   :  { %vm616_vm3 = vcmp.eq.f32.partialorder %v2555_v18, %v2674_v17  ;;  %1979 = vmatpush3.bf16.msra.mxu0 %v1976_v25  ;;  %v1992_v18 = vpack.c.bf16 %v2330_v34, %v2321_v33  ;;  %v481_v33 = vcvt.f32.s32 %v2587_v7  ;;  %v495_v34 = vcvt.f32.s32 %v2589_v41 }
 0x260   :  { %v617_v3 = vsel %vm616_vm3, %v612_v2, inf  ;;  %1981 = vmatprep.subr.bf16.mxu0 %v1980_v1  ;;  %v412_v35 = vshll.u32 %v411_v27, 16  ;;  %v835_v38 = vsub.s32 %v2428_v44, %v2694_v28  ;;  %v837_v7 = vadd.s32 4294967288, %v2428_v44 }
 0x261   :  { %618 = vmin.xlane.f32.xlu1 %v617_v3  ;;  %v844_v41 = vadd.s32 4294967280, %v2428_v44  ;;  %v2710_v19 = vshll.u32 %v481_v33, 16  ;;  %v2712_v14 = vshll.u32 %v495_v34, 16  ;;  %v2716_v11 = vshll.u32 %v509_v36, 16 }
 0x262   :  { %v2718_v12 = vshll.u32 %v523_v37, 16  ;;  %v840_v22 = vsub.s32 %v837_v7, %v2694_v28  ;;  %v2731_v61 = vshll.u32 %v565_v57, 16  ;;  %v607_v10 = vcvt.f32.s32 %v2667_v4 }
 0x263   :  { %1983 = vmatpush3.bf16.msra.mxu0 %v1980_v1  ;;  %v847_v55 = vsub.s32 %v844_v41, %v2694_v28  ;;  %v854_v59 = vsub.s32 %v2721_v23, %v2694_v28  ;;  %v861_v5 = vsub.s32 %v858_v60, %v2694_v28  ;;  %v2740_v48 = vshll.u32 %v593_v21, 16 }
 0x264   :  { %1985 = vmatprep.subr.bf16.mxu0 %v1984_v15  ;;  %v2130_v63 = vmov 1.0   ;;  %v2749_v49 = vadd.s32 4294967256, %v2428_v44  ;;  %v2752_v2 = vadd.s32 4294967248, %v2428_v44  ;;  %v2754_v3 = vshll.u32 %v607_v10, 16 }
 0x265   :  { %v2131_v37 = vmov 1.0|1.0   ;;  %vm884_vm1 = vcmask 523712   ;;  %v2785_v41 = vadd.s32 4294967224, %v2428_v44  ;;  %v889_v60 = vsub.s32 %v886_v62, %v2694_v28 }
 0x266   :  { %v868_v32 = vsub.s32 %v2749_v49, %v2694_v28  ;;  %v875_v33 = vsub.s32 %v2752_v2, %v2694_v28  ;;  %vm891_vm3 = vcmask 589312   ;;  %v907_v2 = vadd.s32 4294967208, %v2428_v44 }
 0x267   :  { %1987 = vmatpush3.bf16.msra.mxu0 %v1984_v15  ;;  %v621_v15 = vcvt.f32.s32 %v2674_v17 }
 0x268   :  { %1989 = vmatprep.subr.bf16.mxu0 %v1988_v16 }
 0x26b   :  { %1991 = vmatpush3.bf16.msra.mxu0 %v1988_v16 }
 0x26c   :  { %1993 = vmatprep.subr.bf16.mxu0 %v1992_v18 }
 0x26f   :  { %1995 = vmatpush3.bf16.msra.mxu0 %v1992_v18 }
 0x270   :  { %1997 = vmatprep.subr.bf16.mxu0 %v1996_v9 }
 0x273   :  { %1999 = vmatpush3.bf16.msra.mxu0 %v1996_v9 }
 0x274   :  { %2001 = vmatprep.subr.bf16.mxu0 %v2000_v26 }
 0x277   :  { %2003 = vmatpush3.bf16.msra.mxu0 %v2000_v26  ;;  %v2004_v26 = vpack.c.bf16 %v2372_v40, %v2363_v39 }
 0x279   :  { %2005 = vmatprep.subr.bf16.mxu0 %v2004_v26 }
 0x27b   :  { %2007 = vmatpush3.bf16.msra.mxu0 %v2004_v26 }
 0x2ce   :  { %v409_v51 = vpop.xlane.xlu0 %408 }
 0x2cf   :  { %v410_v43 = vcvt.f32.s32 %v409_v51 }
 0x2d1   :  { %v413_v6 = vadd.s32 %v412_v35, %v410_v43 }
 0x2d2   :  { %v423_v52 = vpop.xlane.xlu1 %422  ;;  %v437_v47 = vpop.xlane.xlu0 %436 }
 0x2d3   :  { %v424_v8 = vcvt.f32.s32 %v423_v52  ;;  %v438_v53 = vcvt.f32.s32 %v437_v47  ;;  %vm624_vm7 = vcmp.eq.s32.totalorder %v2428_v44, %v413_v6  ;;  %v836_v16 = vrot.slane %v413_v6, %v835_v38 }
 0x2d4   :  { %1722 = vmatprep.mubr.msk.f32.mxu1 %vm624_vm7, %v2130_v63  ;;  %v1456_v4 = vsel %vm624_vm7, 1.0, %v2128_v50  ;;  %v896_v47 = vsub.s32 %v2785_v41, %v2694_v28 }
 0x2d5   :  { %v427_v25 = vadd.s32 %v426_v42, %v424_v8  ;;  %v441_v1 = vadd.s32 %v440_v13, %v438_v53  ;;  %1055 = vxpose.xlu0.b32.start [1/16] %v1456_v4, 128  ;;  %v879_v13 = vadd.s32 4294967240, %v2428_v44 }
 0x2d6   :  { %v451_v18 = vpop.xlane.xlu1 %450  ;;  %v465_v9 = vpop.xlane.xlu0 %464 }
 0x2d7   :  { %v841_v27 = vrot.slane %v427_v25, %v840_v22  ;;  %v848_v29 = vrot.slane %v441_v1, %v847_v55  ;;  %v452_v30 = vcvt.f32.s32 %v451_v18  ;;  %v466_v31 = vcvt.f32.s32 %v465_v9 }
 0x2d8   :  { %vm625_vm10 = vcmp.eq.s32.totalorder %v2428_v44, %v427_v25  ;;  %vm626_vm11 = vcmp.eq.s32.totalorder %v2428_v44, %v441_v1  ;;  %v900_v22 = vadd.s32 4294967216, %v2428_v44  ;;  %v914_v25 = vadd.s32 4294967200, %v2428_v44 }
 0x2d9   :  { %v843_v34 = vsel %vm842_vm4, %v841_v27, %v836_v16  ;;  %v455_v35 = vadd.s32 %v454_v0, %v452_v30  ;;  %v2766_v36 = vadd.s32 %v468_v24, %v466_v31  ;;  %1723 = vmatmul.mubr.msk.f32.vlgmr.msra.gmra.mrb[0].mxu1 %vm625_vm10, %v2130_v63  ;;  %vm1953_vm12 = vmpackc.low %vm625_vm10, %vm624_vm7  ;;  %v1457_v39 = vsel %vm625_vm10, 1.0, %v2128_v50 }
 0x2da   :  { %v850_v40 = vsel %vm849_vm5, %v848_v29, %v843_v34  ;;  %1954 = vmatpush3.bf16.msk.msra.mxu1 %vm1953_vm12, %v2131_v37  ;;  %1056 = vxpose.xlu0.b32.cont [2/16] %v1457_v39, 128  ;;  %v479_v38 = vpop.xlane.xlu1 %478  ;;  %v493_v42 = vpop.xlane.xlu0 %492  ;;  %v1458_v23 = vsel %vm626_vm11, 1.0, %v2128_v50  ;;  %v903_v4 = vsub.s32 %v900_v22, %v2694_v28  ;;  %vm898_vm7 = vcmask 654912  }
 0x2db   :  { %v855_v20 = vrot.slane %v455_v35, %v854_v59  ;;  %v862_v0 = vrot.slane %v2766_v36, %v861_v5  ;;  %1725 = vmatprep.mubr.msk.f32.mxu1 %vm626_vm11, %v2130_v63  ;;  %v480_v24 = vcvt.f32.s32 %v479_v38  ;;  %v494_v7 = vcvt.f32.s32 %v493_v42  ;;  %1955 = vmatprep.subr.bf16.mxu1 %v2129_v58 }
 0x2dc   :  { %vm627_vm14 = vcmp.eq.s32.totalorder %v2428_v44, %v455_v35  ;;  %vm628_vm15 = vcmp.eq.s32.totalorder %v2428_v44, %v2766_v36  ;;  %v921_v34 = vadd.s32 4294967192, %v2428_v44  ;;  %vm912_vm12 = vcmask 786112  }
 0x2dd   :  { %v857_v57 = vsel %vm856_vm6, %v855_v20, %v850_v40  ;;  %v2789_v46 = vadd.s32 %v2710_v19, %v480_v24  ;;  %v2792_v51 = vadd.s32 %v2712_v14, %v494_v7  ;;  %1726 = vmatmul.mubr.msk.f32.gmra.mrb[2].mxu1 %vm627_vm14, %v2130_v63  ;;  %vm1956_vm2 = vmpackc.low %vm627_vm14, %vm626_vm11  ;;  %v882_v19 = vsub.s32 %v879_v13, %v2694_v28 }
 0x2de   :  { %v864_v43 = vsel %vm863_vm8, %v862_v0, %v857_v57  ;;  %1957 = vmatpush3.bf16.msk.msra.mxu1 %vm1956_vm2, %v2131_v37  ;;  %1057 = vxpose.xlu0.b32.cont [3/16] %v1458_v23, 128  ;;  %v507_v14 = vpop.xlane.xlu1 %506  ;;  %v521_v21 = vpop.xlane.xlu0 %520  ;;  %v1459_v5 = vsel %vm627_vm14, 1.0, %v2128_v50  ;;  %vm905_vm8 = vcmask 720512   ;;  %v1460_v30 = vsel %vm628_vm15, 1.0, %v2128_v50 }
 0x2df   :  { %v869_v55 = vrot.slane %v2789_v46, %v868_v32  ;;  %v876_v10 = vrot.slane %v2792_v51, %v875_v33  ;;  %1728 = vmatprep.mubr.msk.f32.mxu1 %vm628_vm15, %v2130_v63  ;;  %v508_v6 = vcvt.f32.s32 %v507_v14  ;;  %v522_v52 = vcvt.f32.s32 %v521_v21  ;;  %1958 = vmatprep.subr.bf16.mxu1 %v2129_v58 }
 0x2e0   :  { %vm629_vm4 = vcmp.eq.s32.totalorder %v2428_v44, %v2789_v46  ;;  %vm630_vm5 = vcmp.eq.s32.totalorder %v2428_v44, %v2792_v51  ;;  %v917_v32 = vsub.s32 %v914_v25, %v2694_v28  ;;  %v928_v38 = vadd.s32 4294967184, %v2428_v44 }
 0x2e1   :  { %v871_v59 = vsel %vm870_vm9, %v869_v55, %v864_v43  ;;  %v2824_v8 = vadd.s32 %v2716_v11, %v508_v6  ;;  %v2827_v53 = vadd.s32 %v2718_v12, %v522_v52  ;;  %1729 = vmatmul.mubr.msk.f32.gmra.mrb[4].mxu1 %vm629_vm4, %v2130_v63  ;;  %vm1959_vm6 = vmpackc.low %vm629_vm4, %vm628_vm15  ;;  %v1461_v20 = vsel %vm629_vm4, 1.0, %v2128_v50 }
 0x2e2   :  { %v878_v11 = vsel %vm877_vm13, %v876_v10, %v871_v59  ;;  %1058 = vxpose.xlu0.b32.cont [4/16] %v1459_v5, 128  ;;  %1731 = vmatprep.mubr.msk.f32.mxu1 %vm630_vm5, %v2130_v63  ;;  %v535_v12 = vpop.xlane.xlu1 %534  ;;  %v549_v49 = vpop.xlane.xlu0 %548  ;;  %v935_v7 = vadd.s32 4294967176, %v2428_v44  ;;  %v931_v43 = vsub.s32 %v928_v38, %v2694_v28  ;;  %v1462_v21 = vsel %vm630_vm5, 1.0, %v2128_v50 }
 0x2e3   :  { %v883_v1 = vrot.slane %v2824_v8, %v882_v19  ;;  %v890_v16 = vrot.slane %v2827_v53, %v889_v60  ;;  %1960 = vmatpush3.bf16.msk.msra.mxu1 %vm1959_vm6, %v2131_v37  ;;  %v536_v18 = vcvt.f32.s32 %v535_v12  ;;  %v550_v9 = vcvt.f32.s32 %v549_v49 }
 0x2e4   :  { %vm631_vm9 = vcmp.eq.s32.totalorder %v2428_v44, %v2824_v8  ;;  %1961 = vmatprep.subr.bf16.mxu1 %v2129_v58  ;;  %vm632_vm10 = vcmp.eq.s32.totalorder %v2428_v44, %v2827_v53  ;;  %vm926_vm6 = vcmask 917312   ;;  %v938_v55 = vsub.s32 %v935_v7, %v2694_v28 }
 0x2e5   :  { %v885_v26 = vsel %vm884_vm1, %v883_v1, %v878_v11  ;;  %v2860_v27 = vadd.s32 %v2723_v45, %v536_v18  ;;  %v2863_v29 = vadd.s32 %v2725_v54, %v550_v9  ;;  %1732 = vmatmul.mubr.msk.f32.gmra.mrb[6].mxu1 %vm631_vm9, %v2130_v63  ;;  %vm1962_vm11 = vmpackc.low %vm631_vm9, %vm630_vm5  ;;  %v910_v54 = vsub.s32 %v907_v2, %v2694_v28 }
 0x2e6   :  { %v892_v45 = vsel %vm891_vm3, %v890_v16, %v885_v26  ;;  %1059 = vxpose.xlu0.b32.cont [5/16] %v1460_v30, 128  ;;  %1734 = vmatprep.mubr.msk.f32.mxu1 %vm632_vm10, %v2130_v63  ;;  %v563_v31 = vpop.xlane.xlu1 %562  ;;  %v577_v33 = vpop.xlane.xlu0 %576  ;;  %vm919_vm1 = vcmask 851712   ;;  %v1464_v8 = vsel %vm632_vm10, 1.0, %v2128_v50 }
 0x2e7   :  { %v897_v35 = vrot.slane %v2860_v27, %v896_v47  ;;  %v904_v36 = vrot.slane %v2863_v29, %v903_v4  ;;  %1963 = vmatpush3.bf16.msk.msra.mxu1 %vm1962_vm11, %v2131_v37  ;;  %v564_v39 = vcvt.f32.s32 %v563_v31  ;;  %v578_v40 = vcvt.f32.s32 %v577_v33 }
 0x2e8   :  { %vm633_vm13 = vcmp.eq.s32.totalorder %v2428_v44, %v2860_v27  ;;  %1964 = vmatprep.subr.bf16.mxu1 %v2129_v58  ;;  %vm634_vm14 = vcmp.eq.s32.totalorder %v2428_v44, %v2863_v29  ;;  %vm933_vm11 = vcmask 982912  }
 0x2e9   :  { %v899_v42 = vsel %vm898_vm7, %v897_v35, %v892_v45  ;;  %v2898_v13 = vadd.s32 %v2731_v61, %v564_v39  ;;  %v2901_v62 = vadd.s32 %v2733_v56, %v578_v40  ;;  %1735 = vmatmul.mubr.msk.f32.gmra.mrb[8].mxu1 %vm633_vm13, %v2130_v63  ;;  %vm1965_vm15 = vmpackc.low %vm633_vm13, %vm632_vm10  ;;  %v924_v56 = vsub.s32 %v921_v34, %v2694_v28  ;;  %v2042_v35 = vld [vmem:[%s3166_s0 + $0x8] sm:$0xff]  ;;  %v2043_v40 = vld [vmem:[%s3166_s0] sm:$0xff] }
 0x2ea   :  { %v906_v61 = vsel %vm905_vm8, %v904_v36, %v899_v42  ;;  %1060 = vxpose.xlu0.b32.cont [6/16] %v1461_v20, 128  ;;  %1737 = vmatprep.mubr.msk.f32.mxu1 %vm634_vm14, %v2130_v63  ;;  %v591_v0 = vpop.xlane.xlu1 %590  ;;  %v605_v24 = vpop.xlane.xlu0 %604  ;;  %v1463_v28 = vsel %vm631_vm9, 1.0, %v2128_v50  ;;  %v1465_v5 = vsel %vm633_vm13, 1.0, %v2128_v50  ;;  %v1466_v53 = vsel %vm634_vm14, 1.0, %v2128_v50  ;;  %v2044_v20 = vld [vmem:[%s3166_s0 + $0x18] sm:$0xff] }
 0x2eb   :  { %v911_v41 = vrot.slane %v2898_v13, %v910_v54  ;;  %v918_v57 = vrot.slane %v2901_v62, %v917_v32  ;;  %1966 = vmatpush3.bf16.msk.msra.mxu1 %vm1965_vm15, %v2131_v37  ;;  %v592_v46 = vcvt.f32.s32 %v591_v0  ;;  %v606_v23 = vcvt.f32.s32 %v605_v24  ;;  %v2045_v24 = vld [vmem:[%s3166_s0 + $0x10] sm:$0xff] }
 0x2ec   :  { %vm635_vm2 = vcmp.eq.s32.totalorder %v2428_v44, %v2898_v13  ;;  %1967 = vmatprep.subr.bf16.mxu1 %v2129_v58  ;;  %vm636_vm3 = vcmp.eq.s32.totalorder %v2428_v44, %v2901_v62  ;;  %vm2132_vm9 = vmmov 0   ;;  %vm964_vm10 = vcmask 253952  }
 0x2ed   :  { %v913_v19 = vsel %vm912_vm12, %v911_v41, %v906_v61  ;;  %v595_v14 = vadd.s32 %v2740_v48, %v592_v46  ;;  %v609_v60 = vadd.s32 %v2754_v3, %v606_v23  ;;  %1738 = vmatmul.mubr.msk.f32.gmra.mrb[10].mxu1 %vm635_vm2, %v2130_v63  ;;  %vm1968_vm4 = vmpackc.low %vm635_vm2, %vm634_vm14  ;;  %v622_v48 = vshll.u32 %v621_v15, 16  ;;  %v2046_v23 = vld [vmem:[%s3166_s0 + $0x28] sm:$0xff]  ;;  %965 = vst.msk [vmem:[%s3173_s7] sm:$0x1] %vm964_vm10, %v2128_v50 }
 0x2ee   :  { %v920_v3 = vsel %vm919_vm1, %v918_v57, %v913_v19  ;;  %1061 = vxpose.xlu0.b32.cont [7/16] %v1462_v21, 128  ;;  %1740 = vmatprep.mubr.msk.f32.mxu1 %vm636_vm3, %v2130_v63  ;;  %v619_v51 = vpop.xlane.xlu1 %618  ;;  %vm940_vm12 = vcmask 1048512   ;;  %v1467_v11 = vsel %vm635_vm2, 1.0, %v2128_v50 }
 0x2ef   :  { %v925_v22 = vrot.slane %v595_v14, %v924_v56  ;;  %1969 = vmatpush3.bf16.msk.msra.mxu1 %vm1968_vm4, %v2131_v37  ;;  %v620_v10 = vcvt.f32.s32 %v619_v51  ;;  %vm637_vm5 = vcmp.eq.s32.totalorder %v2428_v44, %v595_v14  ;;  %v932_v17 = vrot.slane %v609_v60, %v931_v43 }
 0x2f0   :  { %1970 = vmatprep.subr.bf16.mxu1 %v2129_v58  ;;  %vm638_vm7 = vcmp.eq.s32.totalorder %v2428_v44, %v609_v60  ;;  %vm1971_vm8 = vmpackc.low %vm637_vm5, %vm636_vm3  ;;  %v1469_v12 = vsel %vm637_vm5, 1.0, %v2128_v50  ;;  %v2047_v60 = vld [vmem:[%s3166_s0 + $0x20] sm:$0xff] }
 0x2f1   :  { %v927_v15 = vsel %vm926_vm6, %v925_v22, %v920_v3  ;;  %v623_v6 = vadd.s32 %v622_v48, %v620_v10  ;;  %1741 = vmatmul.mubr.msk.f32.gmra.mrb[12].mxu1 %vm637_vm5, %v2130_v63  ;;  %v1470_v4 = vsel %vm638_vm7, 1.0, %v2128_v50  ;;  %v2048_v22 = vld [vmem:[%s3166_s0 + $0x38] sm:$0xff] }
 0x2f2   :  { %1062 = vxpose.xlu0.b32.cont [8/16] %v1463_v28, 128  ;;  %1743 = vmatprep.mubr.msk.f32.mxu1 %vm638_vm7, %v2130_v63  ;;  %v934_v47 = vsel %vm933_vm11, %v932_v17, %v927_v15  ;;  %v2049_v15 = vld [vmem:[%s3166_s0 + $0x30] sm:$0xff] }
 0x2f3   :  { %v939_v52 = vrot.slane %v623_v6, %v938_v55  ;;  %1972 = vmatpush3.bf16.msk.msra.mxu1 %vm1971_vm8, %v2131_v37  ;;  %vm639_vm15 = vcmp.eq.s32.totalorder %v2428_v44, %v623_v6 }
 0x2f4   :  { %1973 = vmatprep.subr.bf16.mxu1 %v2129_v58  ;;  %vm1974_vm1 = vmpackc.low %vm639_vm15, %vm638_vm7  ;;  %v1471_v49 = vsel %vm639_vm15, 1.0, %v2128_v50 }
 0x2f5   :  { %v941_v59 = vsel %vm940_vm12, %v939_v52, %v934_v47  ;;  %1744 = vmatmul.mubr.msk.f32.gmra.mrb[14].mxu1 %vm639_vm15, %v2130_v63 }
 0x2f6   :  { %942 = vst [vmem:[%s3170_s4] sm:$0x1] %v941_v59  ;;  %1063 = vxpose.xlu0.b32.cont [9/16] %v1464_v8, 128  ;;  %1778 = vmatprep.mubr.msk.f32.mxu1 %vm2132_vm9, %v2128_v50  ;;  %v2050_v59 = vld [vmem:[%s3166_s0 + $0x48] sm:$0xff] }
 0x2f7   :  { %1975 = vmatpush3.bf16.msk.msra.mxu1 %vm1974_vm1, %v2131_v37  ;;  %v1468_v37 = vsel %vm636_vm3, 1.0, %v2128_v50 }
 0x2f8   :  { %2008 = vmatprep.subr.bf16.mxu1 %v2129_v58 }
 0x2fa   :  { %1064 = vxpose.xlu0.b32.cont [10/16] %v1465_v5, 128  ;;  %1779 = vmatmul.mubr.f32.vlgmr.msra.gmra.mrb[16].mxu1 %v2130_v63 }
 0x2fb   :  { %1869 = vmatprep.mubr.msk.f32.mxu1 %vm2132_vm9, %v2128_v50 }
 0x2fe   :  { %1065 = vxpose.xlu0.b32.cont [11/16] %v1466_v53, 128 }
 0x302   :  { %1066 = vxpose.xlu0.b32.cont [12/16] %v1467_v11, 128  ;;  %v2051_v11 = vld [vmem:[%s3166_s0 + $0x40] sm:$0xff] }
 0x306   :  { %1067 = vxpose.xlu0.b32.cont [13/16] %v1468_v37, 128 }
 0x30a   :  { %1068 = vxpose.xlu0.b32.cont [14/16] %v1469_v12, 128 }
 0x30e   :  { %1069 = vxpose.xlu0.b32.cont [15/16] %v1470_v4, 128 }
 0x312   :  { %1070 = vxpose.xlu0.b32.end [16/16] %v1471_v49, 128 }
 0x356   :  { %v1071_v2 = vpop.trf.xlu0 }
 0x357   :  { %1813 = vmatprep.mubr.f32.mxu0 %v1071_v2  ;;  %v2052_v2 = vld [vmem:[%s3166_s0 + $0x58] sm:$0xff] }
 0x35a   :  { %v1072_v25 = vpop.trf.xlu0 }
 0x35b   :  { %1814 = vmatmul.mubr.f32.vlgmr.msra.gmra.mrb[16].mxu0 %v1072_v25 }
 0x35e   :  { %v1073_v1 = vpop.trf.xlu0 }
 0x35f   :  { %1816 = vmatprep.mubr.f32.mxu0 %v1073_v1 }
 0x362   :  { %v1074_v16 = vpop.trf.xlu0 }
 0x363   :  { %1817 = vmatmul.mubr.f32.gmra.mrb[18].mxu0 %v1074_v16 }
 0x366   :  { %v1075_v18 = vpop.trf.xlu0 }
 0x367   :  { %1819 = vmatprep.mubr.f32.mxu0 %v1075_v18  ;;  %v2053_v18 = vld [vmem:[%s3166_s0 + $0x50] sm:$0xff] }
 0x36a   :  { %v1076_v44 = vpop.trf.xlu0 }
 0x36b   :  { %1820 = vmatmul.mubr.f32.gmra.mrb[20].mxu0 %v1076_v44 }
 0x36e   :  { %v1077_v9 = vpop.trf.xlu0 }
 0x36f   :  { %1822 = vmatprep.mubr.f32.mxu0 %v1077_v9 }
 0x372   :  { %v1078_v26 = vpop.trf.xlu0 }
 0x373   :  { %1823 = vmatmul.mubr.f32.gmra.mrb[22].mxu0 %v1078_v26 }
 0x376   :  { %v1079_v27 = vpop.trf.xlu0 }
 0x377   :  { %1825 = vmatprep.mubr.f32.mxu0 %v1079_v27 }
 0x37a   :  { %v1080_v29 = vpop.trf.xlu0 }
 0x37b   :  { %1826 = vmatmul.mubr.f32.gmra.mrb[24].mxu0 %v1080_v29  ;;  %v2054_v29 = vld [vmem:[%s3166_s0 + $0x68] sm:$0xff] }
 0x37e   :  { %v1081_v30 = vpop.trf.xlu0 }
 0x37f   :  { %1828 = vmatprep.mubr.f32.mxu0 %v1081_v30 }
 0x382   :  { %v1082_v45 = vpop.trf.xlu0 }
 0x383   :  { %1829 = vmatmul.mubr.f32.gmra.mrb[26].mxu0 %v1082_v45 }
 0x386   :  { %v1083_v54 = vpop.trf.xlu0 }
 0x387   :  { %1831 = vmatprep.mubr.f32.mxu0 %v1083_v54 }
 0x38a   :  { %v1084_v31 = vpop.trf.xlu0 }
 0x38b   :  { %1832 = vmatmul.mubr.f32.gmra.mrb[28].mxu0 %v1084_v31  ;;  %v2055_v31 = vld [vmem:[%s3166_s0 + $0x60] sm:$0xff] }
 0x38e   :  { %v1085_v32 = vpop.trf.xlu0 }
 0x38f   :  { %1834 = vmatprep.mubr.f32.mxu0 %v1085_v32 }
 0x392   :  { %v1086_v33 = vpop.trf.xlu0 }
 0x393   :  { %1835 = vmatmul.mubr.f32.gmra.mrb[30].mxu0 %v1086_v33 }
 0x3ac   :  { %v1724_v34 = vpop.f32.mrb[0].mxu1 }
 0x3ad   :  { %818 = vst.msk [vmem:[#allocation2 + $0x8] sm:$0xff] %vm53_vm0, %v1724_v34  ;;  %v1265_v36 = vsub.f32 %v1724_v34, %v2042_v35  ;;  %v738_v39 = vpop.f32.mrb[1].mxu1 }
 0x3ae   :  { %817 = vst.msk [vmem:[#allocation2] sm:$0xff] %vm53_vm0, %v738_v39  ;;  %v1264_v38 = vsub.f32 %v738_v39, %v2043_v40 }
 0x3af   :  { %v1282_v42 = vmul.f32 %v1265_v36, %v1265_v36  ;;  %v2056_v36 = vld [vmem:[%s3166_s0 + $0x78] sm:$0xff] }
 0x3b0   :  { %v1281_v13 = vmul.f32 %v1264_v38, %v1264_v38  ;;  %v1727_v62 = vpop.f32.mrb[2].mxu1 }
 0x3b1   :  { %820 = vst.msk [vmem:[#allocation2 + $0x18] sm:$0xff] %vm53_vm0, %v1727_v62  ;;  %v1267_v61 = vsub.f32 %v1727_v62, %v2044_v20  ;;  %v748_v56 = vpop.f32.mrb[3].mxu1 }
 0x3b2   :  { %v2009_v0 = vpack.c.bf16 %v1282_v42, %v1281_v13  ;;  %819 = vst.msk [vmem:[#allocation2 + $0x10] sm:$0xff] %vm53_vm0, %v748_v56  ;;  %v1266_v7 = vsub.f32 %v748_v56, %v2045_v24  ;;  %v2057_v42 = vld [vmem:[%s3166_s0 + $0x70] sm:$0xff]  ;;  %v966_v56 = vld [vmem:[#allocation4] sm:$0x1]  ;;  %s2133_s0 = smov [#allocation4]  }
 0x3b3   :  { %v1284_v41 = vmul.f32 %v1267_v61, %v1267_v61  ;;  %s1390_s27 = sshll.u32 %s2133_s0, 4  ;;  %s1391_s27 = int_to_ptr.vmem [resolvable:$true] %s1390_s27 }
 0x3b4   :  { %v1283_v57 = vmul.f32 %v1266_v7, %v1266_v7  ;;  %v1730_v46 = vpop.f32.mrb[4].mxu1  ;;  %2010 = vmatpush3.bf16.msra.mxu1 %v2009_v0  ;;  %s2058_s30 = scalar_lea.vmem %s1391_s27, 16  ;;  %s2062_s8 = scalar_lea.vmem %s1391_s27, 32 }
 0x3b5   :  { %822 = vst.msk [vmem:[#allocation2 + $0x28] sm:$0xff] %vm53_vm0, %v1730_v46  ;;  %v1269_v43 = vsub.f32 %v1730_v46, %v2046_v23  ;;  %v758_v19 = vpop.f32.mrb[5].mxu1  ;;  %2011 = vmatprep.subr.bf16.mxu1 %v2129_v58  ;;  %p2059_p0 = scmp.ne.s32.totalorder %s1391_s27, %s2058_s30  ;;  %p2063_p1 = scmp.lt.s32.totalorder %s1391_s27, %s1391_s27 }
 0x3b6   :  { %v2012_v14 = vpack.c.bf16 %v1284_v41, %v1283_v57  ;;  %821 = vst.msk [vmem:[#allocation2 + $0x20] sm:$0xff] %vm53_vm0, %v758_v19  ;;  %v1268_v21 = vsub.f32 %v758_v19, %v2047_v60  ;;  %p2064_p2 = scmp.lt.s32.totalorder %s2062_s8, %s2058_s30 }
 0x3b7   :  { %v1286_v48 = vmul.f32 %v1269_v43, %v1269_v43 }
 0x3b8   :  { %v1285_v3 = vmul.f32 %v1268_v21, %v1268_v21  ;;  %v1733_v51 = vpop.f32.mrb[6].mxu1  ;;  %2013 = vmatpush3.bf16.msra.mxu1 %v2012_v14  ;;  %p2065_p3 = por %p2064_p2, %p2063_p1 }
 0x3b9   :  { %824 = vst.msk [vmem:[#allocation2 + $0x38] sm:$0xff] %vm53_vm0, %v1733_v51  ;;  %v1271_v55 = vsub.f32 %v1733_v51, %v2048_v22  ;;  %v768_v10 = vpop.f32.mrb[7].mxu1  ;;  %2014 = vmatprep.subr.bf16.mxu1 %v2129_v58 }
 0x3ba   :  { %v2015_v17 = vpack.c.bf16 %v1286_v48, %v1285_v3  ;;  %823 = vst.msk [vmem:[#allocation2 + $0x30] sm:$0xff] %vm53_vm0, %v768_v10  ;;  %v1270_v6 = vsub.f32 %v768_v10, %v2049_v15  ;;  %p2066_p4 = pnand %p2065_p3, %p2059_p0 }
 0x3bb   :  { %v1288_v28 = vmul.f32 %v1271_v55, %v1271_v55 }
 0x3bc   :  { %v1287_v52 = vmul.f32 %v1270_v6, %v1270_v6  ;;  %v1736_v47 = vpop.f32.mrb[8].mxu1  ;;  %2016 = vmatpush3.bf16.msra.mxu1 %v2015_v17 }
 0x3bd   :  { %826 = vst.msk [vmem:[#allocation2 + $0x48] sm:$0xff] %vm53_vm0, %v1736_v47  ;;  %v1273_v8 = vsub.f32 %v1736_v47, %v2050_v59  ;;  %v778_v5 = vpop.f32.mrb[9].mxu1  ;;  %2017 = vmatprep.subr.bf16.mxu1 %v2129_v58 }
 0x3be   :  { %v2018_v53 = vpack.c.bf16 %v1288_v28, %v1287_v52  ;;  %825 = vst.msk [vmem:[#allocation2 + $0x40] sm:$0xff] %vm53_vm0, %v778_v5  ;;  %v1272_v37 = vsub.f32 %v778_v5, %v2051_v11 }
 0x3bf   :  { %v1290_v12 = vmul.f32 %v1273_v8, %v1273_v8 }
 0x3c0   :  { %v1289_v4 = vmul.f32 %v1272_v37, %v1272_v37  ;;  %v1739_v49 = vpop.f32.mrb[10].mxu1  ;;  %2019 = vmatpush3.bf16.msra.mxu1 %v2018_v53 }
 0x3c1   :  { %828 = vst.msk [vmem:[#allocation2 + $0x58] sm:$0xff] %vm53_vm0, %v1739_v49  ;;  %v1275_v25 = vsub.f32 %v1739_v49, %v2052_v2  ;;  %v788_v1 = vpop.f32.mrb[11].mxu1  ;;  %2020 = vmatprep.subr.bf16.mxu1 %v2129_v58 }
 0x3c2   :  { %v2021_v16 = vpack.c.bf16 %v1290_v12, %v1289_v4  ;;  %827 = vst.msk [vmem:[#allocation2 + $0x50] sm:$0xff] %vm53_vm0, %v788_v1  ;;  %v1274_v44 = vsub.f32 %v788_v1, %v2053_v18 }
 0x3c3   :  { %v1292_v9 = vmul.f32 %v1275_v25, %v1275_v25 }
 0x3c4   :  { %v1291_v26 = vmul.f32 %v1274_v44, %v1274_v44  ;;  %v1742_v27 = vpop.f32.mrb[12].mxu1  ;;  %2022 = vmatpush3.bf16.msra.mxu1 %v2021_v16 }
 0x3c5   :  { %830 = vst.msk [vmem:[#allocation2 + $0x68] sm:$0xff] %vm53_vm0, %v1742_v27  ;;  %v1277_v30 = vsub.f32 %v1742_v27, %v2054_v29  ;;  %v798_v45 = vpop.f32.mrb[13].mxu1  ;;  %2023 = vmatprep.subr.bf16.mxu1 %v2129_v58 }
 0x3c6   :  { %v2024_v54 = vpack.c.bf16 %v1292_v9, %v1291_v26  ;;  %829 = vst.msk [vmem:[#allocation2 + $0x60] sm:$0xff] %vm53_vm0, %v798_v45  ;;  %v1276_v32 = vsub.f32 %v798_v45, %v2055_v31 }
 0x3c7   :  { %v1294_v33 = vmul.f32 %v1277_v30, %v1277_v30 }
 0x3c8   :  { %v1293_v34 = vmul.f32 %v1276_v32, %v1276_v32  ;;  %v1745_v35 = vpop.f32.mrb[14].mxu1  ;;  %2025 = vmatpush3.bf16.msra.mxu1 %v2024_v54 }
 0x3c9   :  { %832 = vst.msk [vmem:[#allocation2 + $0x78] sm:$0xff] %vm53_vm0, %v1745_v35  ;;  %v1279_v39 = vsub.f32 %v1745_v35, %v2056_v36  ;;  %v808_v40 = vpop.f32.mrb[15].mxu1  ;;  %2026 = vmatprep.subr.bf16.mxu1 %v2129_v58 }
 0x3ca   :  { %v2027_v38 = vpack.c.bf16 %v1294_v33, %v1293_v34  ;;  %831 = vst.msk [vmem:[#allocation2 + $0x70] sm:$0xff] %vm53_vm0, %v808_v40  ;;  %v1278_v13 = vsub.f32 %v808_v40, %v2057_v42 }
 0x3cb   :  { %v1296_v62 = vmul.f32 %v1279_v39, %v1279_v39 }
 0x3cc   :  { %v1295_v20 = vmul.f32 %v1278_v13, %v1278_v13  ;;  %2028 = vmatpush3.bf16.msra.mxu1 %v2027_v38 }
 0x3cd   :  { %2029 = vmatprep.subr.bf16.mxu1 %v2129_v58  ;;  %v1033_v0 = vpop.f32.mrb[16].mxu1 }
 0x3ce   :  { %v2030_v61 = vpack.c.bf16 %v1296_v62, %v1295_v20  ;;  %v1037_v24 = vadd.f32 %v1033_v0, %v966_v56  ;;  %v1780_v7 = vpop.f32.mrb[17].mxu1 }
 0x3d0   :  { %2031 = vmatpush3.bf16.msra.mxu1 %v2030_v61  ;;  %1038 = vst [vmem:[#allocation4] sm:$0x1] %v1037_v24 }
 0x3d3   :  { %1870 = vmatmul.mubr.f32.vlgmr.msra.gmra.mrb[18].mxu1 %v2130_v63 }
 0x3d4   :  { %2069 = shalt.err (!%p2066_p4)
}
 0x3d5   :  { %s2070_s11 = scalar_lea.hbm %s3171_s5, 16 }
 0x3d6   :  { %p2071_p5 = scmp.ne.s32.totalorder %s3171_s5, %s2070_s11  ;;  %p2074_p6 = scmp.lt.u32.totalorder %s2070_s11, %s3171_s5 }
 0x3d8   :  { %p2076_p7 = pnand %p2074_p6, %p2071_p5 }
 0x3da   :  { %2079 = shalt.err (!%p2076_p7)
}
 0x3db   :  { %1393 = dma.vmem_to_hbm [thread:$0]  %s1391_s27, 16, %s3171_s5, [#allocation5]   ;;  %v1040_v50 = vld [vmem:[#allocation6 + $0x8] sm:$0xff] }
 0x3dc   :  { %s2080_s17 = scalar_lea.vmem %s1376_s29, 2048  ;;  %p2085_p9 = scmp.lt.s32.totalorder %s1376_s29, %s1376_s29 }
 0x3dd   :  { %p2081_p8 = scmp.ne.s32.totalorder %s1376_s29, %s2080_s17  ;;  %p2086_p10 = scmp.lt.s32.totalorder %s2080_s17, %s2080_s17 }
 0x3df   :  { %p2087_p11 = por %p2086_p10, %p2085_p9 }
 0x3e1   :  { %p2088_p12 = pnand %p2087_p11, %p2081_p8 }
 0x3e3   :  { %2091 = shalt.err (!%p2088_p12)
}
 0x3e4   :  { %s2092_s19 = scalar_lea.hbm %s3169_s3, 2048 }
 0x3e5   :  { %p2093_p13 = scmp.ne.s32.totalorder %s3169_s3, %s2092_s19  ;;  %p2096_p0 = scmp.lt.u32.totalorder %s2092_s19, %s3169_s3 }
 0x3e7   :  { %p2098_p1 = pnand %p2096_p0, %p2093_p13 }
 0x3e9   :  { %2101 = shalt.err (!%p2098_p1)
}
 0x3ea   :  { %s2135_s5 = smov 128   ;;  %s2136_s23 = smov 8   ;;  %v1039_v58 = vld [vmem:[#allocation6] sm:$0xff]  ;;  %v1042_v23 = vld [vmem:[#allocation6 + $0x18] sm:$0xff]  ;;  %v1041_v43 = vld [vmem:[#allocation6 + $0x10] sm:$0xff] }
 0x3eb   :  { %1381 = dma.vmem_to_hbm [thread:$0]  %s1376_s29, 2048, %s3169_s3, [#allocation3], %s2135_s5, %s2135_s5, %s2136_s23   ;;  %v1044_v48 = vld [vmem:[#allocation6 + $0x28] sm:$0xff]  ;;  %v1043_v3 = vld [vmem:[#allocation6 + $0x20] sm:$0xff]  ;;  %v1046_v17 = vld [vmem:[#allocation6 + $0x38] sm:$0xff] }
 0x3ec   :  { %v1045_v15 = vld [vmem:[#allocation6 + $0x30] sm:$0xff]  ;;  %v1048_v59 = vld [vmem:[#allocation6 + $0x48] sm:$0xff]  ;;  %v1047_v8 = vld [vmem:[#allocation6 + $0x40] sm:$0xff]  ;;  %s2137_s3 = smov [#allocation6]  }
 0x3ed   :  { %v1050_v12 = vld [vmem:[#allocation6 + $0x58] sm:$0xff]  ;;  %v1049_v4 = vld [vmem:[#allocation6 + $0x50] sm:$0xff]  ;;  %v1052_v16 = vld [vmem:[#allocation6 + $0x68] sm:$0xff]  ;;  %s1399_s26 = sshll.u32 %s2137_s3, 4  ;;  %s1400_s26 = int_to_ptr.vmem [resolvable:$true] %s1399_s26 }
 0x3ee   :  { %v1051_v18 = vld [vmem:[#allocation6 + $0x60] sm:$0xff]  ;;  %v1054_v29 = vld [vmem:[#allocation6 + $0x78] sm:$0xff]  ;;  %v1053_v30 = vld [vmem:[#allocation6 + $0x70] sm:$0xff]  ;;  %s2102_s0 = scalar_lea.vmem %s1400_s26, 2048  ;;  %p2107_p3 = scmp.lt.s32.totalorder %s1400_s26, %s1400_s26 }
 0x3ef   :  { %p2103_p2 = scmp.ne.s32.totalorder %s1400_s26, %s2102_s0  ;;  %p2108_p4 = scmp.lt.s32.totalorder %s2102_s0, %s2102_s0 }
 0x3f1   :  { %p2109_p5 = por %p2108_p4, %p2107_p3 }
 0x3f3   :  { %p2110_p6 = pnand %p2109_p5, %p2103_p2 }
 0x42e   :  { %v1815_v63 = vpop.f32.mrb[16].mxu0 }
 0x42f   :  { %v1233_v41 = vadd.f32 %v1815_v63, %v1040_v50  ;;  %v1153_v57 = vpop.f32.mrb[17].mxu0 }
 0x430   :  { %v1232_v46 = vadd.f32 %v1153_v57, %v1039_v58 }
 0x431   :  { %1249 = vst.msk [vmem:[#allocation6 + $0x8] sm:$0xff] %vm53_vm0, %v1233_v41 }
 0x432   :  { %1248 = vst.msk [vmem:[#allocation6] sm:$0xff] %vm53_vm0, %v1232_v46 }
 0x436   :  { %v1818_v19 = vpop.f32.mrb[18].mxu0 }
 0x437   :  { %v1235_v14 = vadd.f32 %v1818_v19, %v1042_v23  ;;  %v1163_v60 = vpop.f32.mrb[19].mxu0 }
 0x438   :  { %v1234_v21 = vadd.f32 %v1163_v60, %v1041_v43 }
 0x439   :  { %1251 = vst.msk [vmem:[#allocation6 + $0x18] sm:$0xff] %vm53_vm0, %v1235_v14 }
 0x43a   :  { %1250 = vst.msk [vmem:[#allocation6 + $0x10] sm:$0xff] %vm53_vm0, %v1234_v21 }
 0x43e   :  { %v1821_v51 = vpop.f32.mrb[20].mxu0 }
 0x43f   :  { %v1237_v22 = vadd.f32 %v1821_v51, %v1044_v48  ;;  %v1173_v55 = vpop.f32.mrb[21].mxu0 }
 0x440   :  { %v1236_v10 = vadd.f32 %v1173_v55, %v1043_v3 }
 0x441   :  { %1253 = vst.msk [vmem:[#allocation6 + $0x28] sm:$0xff] %vm53_vm0, %v1237_v22 }
 0x442   :  { %1252 = vst.msk [vmem:[#allocation6 + $0x20] sm:$0xff] %vm53_vm0, %v1236_v10 }
 0x446   :  { %v1824_v6 = vpop.f32.mrb[22].mxu0 }
 0x447   :  { %v1239_v28 = vadd.f32 %v1824_v6, %v1046_v17  ;;  %v1183_v52 = vpop.f32.mrb[23].mxu0 }
 0x448   :  { %v1238_v47 = vadd.f32 %v1183_v52, %v1045_v15 }
 0x449   :  { %1255 = vst.msk [vmem:[#allocation6 + $0x38] sm:$0xff] %vm53_vm0, %v1239_v28 }
 0x44a   :  { %1254 = vst.msk [vmem:[#allocation6 + $0x30] sm:$0xff] %vm53_vm0, %v1238_v47 }
 0x44e   :  { %v1827_v5 = vpop.f32.mrb[24].mxu0 }
 0x44f   :  { %v1241_v53 = vadd.f32 %v1827_v5, %v1048_v59  ;;  %v1193_v11 = vpop.f32.mrb[25].mxu0 }
 0x450   :  { %v1240_v37 = vadd.f32 %v1193_v11, %v1047_v8 }
 0x451   :  { %1257 = vst.msk [vmem:[#allocation6 + $0x48] sm:$0xff] %vm53_vm0, %v1241_v53 }
 0x452   :  { %1256 = vst.msk [vmem:[#allocation6 + $0x40] sm:$0xff] %vm53_vm0, %v1240_v37 }
 0x456   :  { %v1830_v49 = vpop.f32.mrb[26].mxu0 }
 0x457   :  { %v1243_v2 = vadd.f32 %v1830_v49, %v1050_v12  ;;  %v1203_v25 = vpop.f32.mrb[27].mxu0 }
 0x458   :  { %v1242_v1 = vadd.f32 %v1203_v25, %v1049_v4 }
 0x459   :  { %1259 = vst.msk [vmem:[#allocation6 + $0x58] sm:$0xff] %vm53_vm0, %v1243_v2 }
 0x45a   :  { %1258 = vst.msk [vmem:[#allocation6 + $0x50] sm:$0xff] %vm53_vm0, %v1242_v1 }
 0x45e   :  { %v1833_v44 = vpop.f32.mrb[28].mxu0 }
 0x45f   :  { %v1245_v9 = vadd.f32 %v1833_v44, %v1052_v16  ;;  %v1213_v26 = vpop.f32.mrb[29].mxu0 }
 0x460   :  { %v1244_v27 = vadd.f32 %v1213_v26, %v1051_v18 }
 0x461   :  { %1261 = vst.msk [vmem:[#allocation6 + $0x68] sm:$0xff] %vm53_vm0, %v1245_v9 }
 0x462   :  { %1260 = vst.msk [vmem:[#allocation6 + $0x60] sm:$0xff] %vm53_vm0, %v1244_v27 }
 0x466   :  { %v1836_v45 = vpop.f32.mrb[30].mxu0 }
 0x467   :  { %v1247_v54 = vadd.f32 %v1836_v45, %v1054_v29  ;;  %v1223_v31 = vpop.f32.mrb[31].mxu0 }
 0x468   :  { %v1246_v32 = vadd.f32 %v1223_v31, %v1053_v30 }
 0x469   :  { %1263 = vst.msk [vmem:[#allocation6 + $0x78] sm:$0xff] %vm53_vm0, %v1247_v54 }
 0x46a   :  { %1262 = vst.msk [vmem:[#allocation6 + $0x70] sm:$0xff] %vm53_vm0, %v1246_v32 }
 0x46b   :  { %2113 = shalt.err (!%p2110_p6)
}
 0x46c   :  { %s2114_s29 = scalar_lea.hbm %s3172_s6, 2048 }
 0x46d   :  { %p2115_p7 = scmp.ne.s32.totalorder %s3172_s6, %s2114_s29  ;;  %p2118_p8 = scmp.lt.u32.totalorder %s2114_s29, %s3172_s6 }
 0x46f   :  { %p2120_p9 = pnand %p2118_p8, %p2115_p7 }
 0x471   :  { %2123 = shalt.err (!%p2120_p9)
}
 0x472   :  { %1405 = dma.vmem_to_hbm [thread:$0]  %s1400_s26, 2048, %s3172_s6, [#allocation5], %s2135_s5, %s2135_s5, %s2136_s23  }
 0x473   :  { %v1280_v33 = vld [vmem:[%s3173_s7] sm:$0x1] }
 0x4a6   :  { %v1363_v34 = vpop.f32.mrb[18].mxu1 }
 0x4a7   :  { %v1367_v35 = vadd.f32 %v1363_v34, %v1280_v33  ;;  %v1871_v36 = vpop.f32.mrb[19].mxu1 }
 0x4a9   :  { %1369 = vst.msk [vmem:[%s3173_s7] sm:$0x1] %vm964_vm10, %v1367_v35 }
 0x4aa   :  { %2124 = dma.done.wait [#allocation3], 2048  }
 0x4ab   :  { %2125 = vsyncadd [#allocation3], 4294965248 }
 0x4ac   :  { %2126 = dma.done.wait [#allocation5], 2064  }
 0x4ad   :  { %2127 = vsyncadd [#allocation5], 4294965232 }
 0x4ae   :  { %1421 = vsyncpa [#allocation3], 1 }
 0x4af   :  { %1422 = vsyncpa [#allocation5], 1 }

</bundles_post_ra>
